<compile_context>
chip_gen: v5e
topology: v5e:2x2
jax: 0.10.0
libtpu: 0.0.40
codegen_flags: <defaults>
</compile_context>

<pallas_src>
import jax
import jax.numpy as jnp
from jax.experimental import pallas as pl
from jax.experimental.pallas import tpu as pltpu

H1, H2 = 1024, 512        # hidden widths from the PyTorch module
LANE = 128                # TPU lane width


def _round_up(x, m):
    return (x + m - 1) // m * m


def mlp_kernel(x_ref, w1_ref, b1_ref, w2_ref, b2_ref, w3_ref, b3_ref, o_ref):
    # Layer 1: Linear(input_dim, 1024) + ReLU   (Dropout -> identity in eval)
    h1 = jnp.dot(x_ref[...], w1_ref[...], preferred_element_type=jnp.float32)
    h1 = jnp.maximum(h1 + b1_ref[...], 0.0)
    # Layer 2: Linear(1024, 512) + ReLU         (Dropout -> identity in eval)
    h2 = jnp.dot(h1.astype(jnp.bfloat16), w2_ref[...],
                 preferred_element_type=jnp.float32)
    h2 = jnp.maximum(h2 + b2_ref[...], 0.0)
    # Layer 3: Linear(512, num_classes) -- output width padded to 128 lanes,
    # padded columns of w3/b3 are zero so they contribute nothing.
    out = jnp.dot(h2.astype(jnp.bfloat16), w3_ref[...],
                  preferred_element_type=jnp.float32)
    o_ref[...] = (out + b3_ref[...]).astype(o_ref.dtype)


def simple_classifier_forward(x, params, *, batch_tile=256):
    """x: (B, input_dim) float32. params: w1/b1/w2/b2/w3/b3 stored (in, out)."""
    B, input_dim = x.shape
    num_classes = params["w3"].shape[1]

    K = _round_up(input_dim, LANE)          # lane-dense contraction dim, layer 1
    N3 = _round_up(num_classes, LANE)       # lane-dense output width
    TB = min(batch_tile, _round_up(B, 8))   # batch tile (sublane aligned)
    Bp = _round_up(B, TB)
    grid = (Bp // TB,)

    # Host-side zero padding + bf16 weight cast (biases stay f32).
    xp = jnp.zeros((Bp, K), jnp.bfloat16).at[:B, :input_dim].set(
        x.astype(jnp.bfloat16))
    w1 = jnp.zeros((K, H1), jnp.bfloat16).at[:input_dim, :].set(
        params["w1"].astype(jnp.bfloat16))
    w2 = params["w2"].astype(jnp.bfloat16)
    w3 = jnp.zeros((H2, N3), jnp.bfloat16).at[:, :num_classes].set(
        params["w3"].astype(jnp.bfloat16))
    b1 = params["b1"].reshape(1, H1).astype(jnp.float32)
    b2 = params["b2"].reshape(1, H2).astype(jnp.float32)
    b3 = jnp.zeros((1, N3), jnp.float32).at[:, :num_classes].set(
        params["b3"].reshape(1, num_classes).astype(jnp.float32))

    # VMEM budget: resident weights/biases + double-buffered x/o tiles + h1/h2.
    weight_bytes = (K * H1 + H1 * H2 + H2 * N3) * 2 + (H1 + H2 + N3) * 4
    tile_bytes = 2 * (TB * K * 2 + TB * N3 * 4)          # double-buffered x, o
    act_bytes = TB * (H1 + H2) * 4                       # f32 intermediates
    vmem_limit = int(min(max(weight_bytes + tile_bytes + act_bytes + (8 << 20),
                             32 << 20), 64 << 20))

    flops = 2 * Bp * (K * H1 + H1 * H2 + H2 * N3)
    bytes_accessed = Bp * K * 2 + weight_bytes + Bp * N3 * 4

    out = pl.pallas_call(
        mlp_kernel,
        out_shape=jax.ShapeDtypeStruct((Bp, N3), jnp.float32),
        grid=grid,
        in_specs=[
            pl.BlockSpec((TB, K), lambda i: (i, 0)),     # x: tiled over batch
            pl.BlockSpec((K, H1), lambda i: (0, 0)),     # weights/biases resident
            pl.BlockSpec((1, H1), lambda i: (0, 0)),
            pl.BlockSpec((H1, H2), lambda i: (0, 0)),
            pl.BlockSpec((1, H2), lambda i: (0, 0)),
            pl.BlockSpec((H2, N3), lambda i: (0, 0)),
            pl.BlockSpec((1, N3), lambda i: (0, 0)),
        ],
        out_specs=pl.BlockSpec((TB, N3), lambda i: (i, 0)),
        compiler_params=pltpu.CompilerParams(
            dimension_semantics=("parallel",),
            vmem_limit_bytes=vmem_limit,
        ),
        cost_estimate=pl.CostEstimate(
            flops=flops, bytes_accessed=bytes_accessed, transcendentals=0),
    )(xp, w1, b1, w2, b2, w3, b3)

    return out[:B, :num_classes]


def init_params(key, input_dim, num_classes):
    """Deterministic init mimicking torch.nn.Linear default (uniform +-1/sqrt(fan_in))."""
    def linear_init(k, fan_in, fan_out):
        kw, kb = jax.random.split(k)
        bound = 1.0 / jnp.sqrt(fan_in)
        # Stored transposed relative to torch: (in, out) so the kernel does x @ W.
        w = jax.random.uniform(kw, (fan_in, fan_out), jnp.float32, -bound, bound)
        b = jax.random.uniform(kb, (1, fan_out), jnp.float32, -bound, bound)
        return w, b

    k1, k2, k3 = jax.random.split(key, 3)
    w1, b1 = linear_init(k1, input_dim, H1)
    w2, b2 = linear_init(k2, H1, H2)
    w3, b3 = linear_init(k3, H2, num_classes)
    return {"w1": w1, "b1": b1, "w2": w2, "b2": b2, "w3": w3, "b3": b3}


if __name__ == "__main__":
    key = jax.random.PRNGKey(0)
    kx, kp = jax.random.split(key)

    B, input_dim, num_classes = 8, 32, 10
    x = jax.random.normal(kx, (B, input_dim), jnp.float32)
    params = init_params(kp, input_dim, num_classes)

    out = simple_classifier_forward(x, params)
    out = jax.block_until_ready(out)

    # Pure-JAX reference with the SAME bf16 weight/activation rounding as the kernel.
    x_bf = x.astype(jnp.bfloat16)
    w1_bf = params["w1"].astype(jnp.bfloat16)
    w2_bf = params["w2"].astype(jnp.bfloat16)
    w3_bf = params["w3"].astype(jnp.bfloat16)
    h1 = jnp.maximum(jnp.dot(x_bf, w1_bf, preferred_element_type=jnp.float32)
                     + params["b1"], 0.0)
    h2 = jnp.maximum(jnp.dot(h1.astype(jnp.bfloat16), w2_bf,
                             preferred_element_type=jnp.float32) + params["b2"], 0.0)
    ref = jnp.dot(h2.astype(jnp.bfloat16), w3_bf,
                  preferred_element_type=jnp.float32) + params["b3"]

    assert out.shape == (B, num_classes)
    assert jnp.allclose(out, ref, atol=2e-2, rtol=2e-2), \
        f"max abs err {jnp.max(jnp.abs(out - ref))}"

    print("KERNEL_OK")
</pallas_src>

<mosaic_0001>
module attributes {stable_mosaic.version = 11 : i64} {
  func.func @mlp_kernel(%arg0: i32, %arg1: memref<8x128xbf16, #tpu.memory_space<vmem>>, %arg2: memref<128x1024xbf16, #tpu.memory_space<vmem>>, %arg3: memref<1x1024xf32, #tpu.memory_space<vmem>>, %arg4: memref<1024x512xbf16, #tpu.memory_space<vmem>>, %arg5: memref<1x512xf32, #tpu.memory_space<vmem>>, %arg6: memref<512x128xbf16, #tpu.memory_space<vmem>>, %arg7: memref<1x128xf32, #tpu.memory_space<vmem>>, %arg8: memref<8x128xf32, #tpu.memory_space<vmem>>) attributes {dimension_semantics = [#tpu.dimension_semantics<parallel>], iteration_bounds = array<i64: 1>, scalar_prefetch = 0 : i64, scratch_operands = 0 : i64, tpu.core_type = #tpu.core_type<tc>, window_params = [{transform_indices = @transform_0, window_bounds = array<i64: 8, 128>}, {pipeline_mode = #tpu.pipeline_mode<synchronous>, transform_indices = @transform_1, window_bounds = array<i64: 128, 1024>}, {pipeline_mode = #tpu.pipeline_mode<synchronous>, transform_indices = @transform_2, window_bounds = array<i64: 1, 1024>}, {pipeline_mode = #tpu.pipeline_mode<synchronous>, transform_indices = @transform_3, window_bounds = array<i64: 1024, 512>}, {pipeline_mode = #tpu.pipeline_mode<synchronous>, transform_indices = @transform_4, window_bounds = array<i64: 1, 512>}, {pipeline_mode = #tpu.pipeline_mode<synchronous>, transform_indices = @transform_5, window_bounds = array<i64: 512, 128>}, {pipeline_mode = #tpu.pipeline_mode<synchronous>, transform_indices = @transform_6, window_bounds = array<i64: 1, 128>}, {transform_indices = @transform_7, window_bounds = array<i64: 8, 128>}]} {
    %c0 = arith.constant 0 : index
    %c0_0 = arith.constant 0 : index
    %0 = vector.load %arg1[%c0, %c0_0] : memref<8x128xbf16, #tpu.memory_space<vmem>>, vector<8x128xbf16>
    %c0_1 = arith.constant 0 : index
    %c0_2 = arith.constant 0 : index
    %1 = vector.load %arg2[%c0_1, %c0_2] : memref<128x1024xbf16, #tpu.memory_space<vmem>>, vector<128x1024xbf16>
    %cst = arith.constant dense<0.000000e+00> : vector<8x1024xf32>
    %2 = tpu.matmul %0, %1, %cst {dimension_numbers = #tpu.dot_dimension_numbers<[1], [0], [0], [1], [0, 0, 1, 1], [], []>} : vector<8x128xbf16>, vector<128x1024xbf16>, vector<8x1024xf32> -> vector<8x1024xf32>
    %c0_3 = arith.constant 0 : index
    %c0_4 = arith.constant 0 : index
    %3 = vector.load %arg3[%c0_3, %c0_4] : memref<1x1024xf32, #tpu.memory_space<vmem>>, vector<1x1024xf32>
    %4 = vector.broadcast %3 : vector<1x1024xf32> to vector<8x1024xf32>
    %5 = arith.addf %2, %4 : vector<8x1024xf32>
    %cst_5 = arith.constant 0.000000e+00 : f32
    %6 = vector.broadcast %cst_5 : f32 to vector<8x1024xf32>
    %7 = arith.maximumf %5, %6 : vector<8x1024xf32>
    %8 = arith.truncf %7 : vector<8x1024xf32> to vector<8x1024xbf16>
    %c0_6 = arith.constant 0 : index
    %c0_7 = arith.constant 0 : index
    %9 = vector.load %arg4[%c0_6, %c0_7] : memref<1024x512xbf16, #tpu.memory_space<vmem>>, vector<1024x512xbf16>
    %cst_8 = arith.constant dense<0.000000e+00> : vector<8x512xf32>
    %10 = tpu.matmul %8, %9, %cst_8 {dimension_numbers = #tpu.dot_dimension_numbers<[1], [0], [0], [1], [0, 0, 1, 1], [], []>} : vector<8x1024xbf16>, vector<1024x512xbf16>, vector<8x512xf32> -> vector<8x512xf32>
    %c0_9 = arith.constant 0 : index
    %c0_10 = arith.constant 0 : index
    %11 = vector.load %arg5[%c0_9, %c0_10] : memref<1x512xf32, #tpu.memory_space<vmem>>, vector<1x512xf32>
    %12 = vector.broadcast %11 : vector<1x512xf32> to vector<8x512xf32>
    %13 = arith.addf %10, %12 : vector<8x512xf32>
    %cst_11 = arith.constant 0.000000e+00 : f32
    %14 = vector.broadcast %cst_11 : f32 to vector<8x512xf32>
    %15 = arith.maximumf %13, %14 : vector<8x512xf32>
    %16 = arith.truncf %15 : vector<8x512xf32> to vector<8x512xbf16>
    %c0_12 = arith.constant 0 : index
    %c0_13 = arith.constant 0 : index
    %17 = vector.load %arg6[%c0_12, %c0_13] : memref<512x128xbf16, #tpu.memory_space<vmem>>, vector<512x128xbf16>
    %cst_14 = arith.constant dense<0.000000e+00> : vector<8x128xf32>
    %18 = tpu.matmul %16, %17, %cst_14 {dimension_numbers = #tpu.dot_dimension_numbers<[1], [0], [0], [1], [0, 0, 1, 1], [], []>} : vector<8x512xbf16>, vector<512x128xbf16>, vector<8x128xf32> -> vector<8x128xf32>
    %c0_15 = arith.constant 0 : index
    %c0_16 = arith.constant 0 : index
    %19 = vector.load %arg7[%c0_15, %c0_16] : memref<1x128xf32, #tpu.memory_space<vmem>>, vector<1x128xf32>
    %20 = vector.broadcast %19 : vector<1x128xf32> to vector<8x128xf32>
    %21 = arith.addf %18, %20 : vector<8x128xf32>
    %c0_17 = arith.constant 0 : index
    %c0_18 = arith.constant 0 : index
    %22 = vector.load %arg8[%c0_17, %c0_18] : memref<8x128xf32, #tpu.memory_space<vmem>>, vector<8x128xf32>
    tpu.vector_store %arg8[%c0_17, %c0_18], %21 {strides = array<i32>} : memref<8x128xf32, #tpu.memory_space<vmem>>, vector<8x128xf32>,
    return
  }
  func.func @transform_0(%arg0: i32) -> (i32, i32) {
    %c0_i32 = arith.constant 0 : i32
    %c0_i32_0 = arith.constant 0 : i32
    return %arg0, %c0_i32 : i32, i32
  }
  func.func @transform_1(%arg0: i32) -> (i32, i32) {
    %c0_i32 = arith.constant 0 : i32
    %c0_i32_0 = arith.constant 0 : i32
    %c0_i32_1 = arith.constant 0 : i32
    return %c0_i32, %c0_i32_0 : i32, i32
  }
  func.func @transform_2(%arg0: i32) -> (i32, i32) {
    %c0_i32 = arith.constant 0 : i32
    %c0_i32_0 = arith.constant 0 : i32
    %c0_i32_1 = arith.constant 0 : i32
    return %c0_i32, %c0_i32_0 : i32, i32
  }
  func.func @transform_3(%arg0: i32) -> (i32, i32) {
    %c0_i32 = arith.constant 0 : i32
    %c0_i32_0 = arith.constant 0 : i32
    %c0_i32_1 = arith.constant 0 : i32
    return %c0_i32, %c0_i32_0 : i32, i32
  }
  func.func @transform_4(%arg0: i32) -> (i32, i32) {
    %c0_i32 = arith.constant 0 : i32
    %c0_i32_0 = arith.constant 0 : i32
    %c0_i32_1 = arith.constant 0 : i32
    return %c0_i32, %c0_i32_0 : i32, i32
  }
  func.func @transform_5(%arg0: i32) -> (i32, i32) {
    %c0_i32 = arith.constant 0 : i32
    %c0_i32_0 = arith.constant 0 : i32
    %c0_i32_1 = arith.constant 0 : i32
    return %c0_i32, %c0_i32_0 : i32, i32
  }
  func.func @transform_6(%arg0: i32) -> (i32, i32) {
    %c0_i32 = arith.constant 0 : i32
    %c0_i32_0 = arith.constant 0 : i32
    %c0_i32_1 = arith.constant 0 : i32
    return %c0_i32, %c0_i32_0 : i32, i32
  }
  func.func @transform_7(%arg0: i32) -> (i32, i32) {
    %c0_i32 = arith.constant 0 : i32
    %c0_i32_0 = arith.constant 0 : i32
    return %arg0, %c0_i32 : i32, i32
  }
}

</mosaic_0001>

<bundles_post_ra>
// kernel: tpu_custom_call.1
= control target key start
LH: loop header
LB: loop body
LE: loop exit
PB: predicated region body
PF: predicated region fallthrough
CT: control target
= control target key end

     0   :  { %12 = vsyncpa [#allocation3], 0  ;;  %s5068_s0 = inlined_call_operand.hbm [shape: bf16[8,128], index: 0, kind: input, shape index: {}]   ;;  %s5069_s1 = inlined_call_operand.hbm [shape: bf16[128,1024], index: 1, kind: input, shape index: {}]   ;;  %s5070_s2 = inlined_call_operand.hbm [shape: f32[1,1024], index: 2, kind: input, shape index: {}]   ;;  %s5071_s3 = inlined_call_operand.hbm [shape: bf16[1024,512], index: 3, kind: input, shape index: {}]   ;;  %s5072_s4 = inlined_call_operand.hbm [shape: f32[1,512], index: 4, kind: input, shape index: {}]   ;;  %s5073_s5 = inlined_call_operand.hbm [shape: bf16[512,128], index: 5, kind: input, shape index: {}]   ;;  %s5074_s6 = inlined_call_operand.vmem [shape: f32[1,128], index: 6, kind: input, shape index: {}]   ;;  %s5075_s7 = inlined_call_operand.hbm [shape: f32[8,128], index: 7, kind: output, shape index: {}]  }
   0x1   :  { %13 = vsyncpa [#allocation6], 0 }
   0x2   :  { %14 = vsyncpa [#allocation9], 0 }
   0x3   :  { %15 = vsyncpa [#allocation12], 0  ;;  %s32_s26 = sshll.u32 %s5069_s1, 4  ;;  %s33_s26 = int_to_ptr.hbm [resolvable:$true] %s32_s26 }
   0x4   :  { %16 = vsyncpa [#allocation4], 0  ;;  %s4893_s27 = smov [#allocation5]   ;;  %s56_s8 = sshll.u32 %s5071_s3, 4  ;;  %s57_s8 = int_to_ptr.hbm [resolvable:$true] %s56_s8 }
   0x5   :  { %s34_s28 = sshll.u32 %s4893_s27, 4  ;;  %s4894_s9 = smov 512   ;;  %s35_s28 = int_to_ptr.vmem [resolvable:$true] %s34_s28 }
   0x6   :  { %s4895_s10 = smov 32   ;;  %s4896_s11 = smov [#allocation8]  }
   0x7   :  { %40 = dma.hbm_to_vmem [thread:$0]  %s33_s26, 8192, %s35_s28, [#allocation6], %s4894_s9, %s4894_s9, %s4895_s10  }
   0x8   :  { %s58_s12 = sshll.u32 %s4896_s11, 4  ;;  %s4897_s13 = smov 256   ;;  %s59_s12 = int_to_ptr.vmem [resolvable:$true] %s58_s12 }
   0x9   :  { %s4898_s14 = smov 16   ;;  %s22_s16 = sshll.u32 %s5068_s0, 4  ;;  %s23_s16 = int_to_ptr.hbm [resolvable:$true] %s22_s16 }
   0xa   :  { %64 = dma.hbm_to_vmem [thread:$0]  %s57_s8, 32768, %s59_s12, [#allocation9], %s4897_s13, %s4897_s13, %s4898_s14  }
   0xb   :  { %s4899_s17 = smov [#allocation2]   ;;  %s46_s20 = sshll.u32 %s5070_s2, 4  ;;  %s47_s20 = int_to_ptr.hbm [resolvable:$true] %s46_s20 }
   0xc   :  { %s24_s18 = sshll.u32 %s4899_s17, 4  ;;  %s4900_s21 = smov [#allocation7]   ;;  %s25_s18 = int_to_ptr.vmem [resolvable:$true] %s24_s18 }
   0xd   :  { %27 = dma.hbm_to_vmem [thread:$0]  %s23_s16, 64, %s25_s18, [#allocation3]  }
   0xe   :  { %s48_s22 = sshll.u32 %s4900_s21, 4  ;;  %s70_s25 = sshll.u32 %s5072_s4, 4  ;;  %s49_s22 = int_to_ptr.vmem [resolvable:$true] %s48_s22  ;;  %s71_s25 = int_to_ptr.hbm [resolvable:$true] %s70_s25 }
   0xf   :  { %51 = dma.hbm_to_vmem [thread:$0]  %s47_s20, 128, %s49_s22, [#allocation6]  }
  0x10   :  { %s80_s27 = sshll.u32 %s5073_s5, 4  ;;  %s4901_s28 = smov [#allocation10]   ;;  %s81_s27 = int_to_ptr.hbm [resolvable:$true] %s80_s27 }
  0x11   :  { %s72_s29 = sshll.u32 %s4901_s28, 4  ;;  %s4902_s2 = smov [#allocation11]   ;;  %s73_s29 = int_to_ptr.vmem [resolvable:$true] %s72_s29 }
  0x12   :  { %75 = dma.hbm_to_vmem [thread:$0]  %s71_s25, 64, %s73_s29, [#allocation9]  }
  0x13   :  { %s82_s30 = sshll.u32 %s4902_s2, 4  ;;  %s4903_s8 = smov 64   ;;  %s83_s30 = int_to_ptr.vmem [resolvable:$true] %s82_s30 }
  0x14   :  { %s4904_s9 = smov 4  }
  0x15   :  { %88 = dma.hbm_to_vmem [thread:$0]  %s81_s27, 4096, %s83_s30, [#allocation12], %s4903_s8, %s4903_s8, %s4904_s9  }
  0x16   :  { %4883 = dma.done.wait [#allocation3], 64  }
  0x17   :  { %4884 = vsyncadd [#allocation3], 4294967232 }
  0x18   :  { %4885 = dma.done.wait [#allocation6], 8320  }
  0x19   :  { %4886 = vsyncadd [#allocation6], 4294958976 }
  0x1a   :  { %4887 = dma.done.wait [#allocation9], 32832  }
  0x1b   :  { %4888 = vsyncadd [#allocation9], 4294934464 }
  0x1c   :  { %4889 = dma.done.wait [#allocation12], 4096  }
  0x1d   :  { %4890 = vsyncadd [#allocation12], 4294963200  ;;  %v3167_v0 = vld [vmem:[#allocation5 + $0x1c0] sm:$0xf]  ;;  %v4405_v2 = vld [vmem:[#allocation5 + $0x1c4] sm:$0xf] }
  0x1e   :  { %v4409_v1 = vld [vmem:[#allocation5 + $0x1dc] sm:$0xf0]  ;;  %v3169_v4 = vld [vmem:[#allocation5 + $0x1e0] sm:$0xf0]  ;;  %v3175_v5 = vld [vmem:[#allocation5 + $0x1c8] sm:$0xf] }
  0x1f   :  { %v3168_v3 = vor.u32 %v4409_v1, %v3167_v0  ;;  %v4410_v6 = vld [vmem:[#allocation5 + $0x1e4] sm:$0xf0]  ;;  %v3172_v7 = vor.u32 %v4405_v2, %v3169_v4  ;;  %v4406_v9 = vld [vmem:[#allocation5 + $0x1cc] sm:$0xf]  ;;  %v3135_v11 = vld [vmem:[#allocation5 + $0x180] sm:$0xf] }
  0x20   :  { %v3176_v8 = vor.u32 %v4410_v6, %v3175_v5  ;;  %v3177_v10 = vld [vmem:[#allocation5 + $0x1e8] sm:$0xf0]  ;;  %v4401_v13 = vld [vmem:[#allocation5 + $0x19c] sm:$0xf0]  ;;  %v4397_v14 = vld [vmem:[#allocation5 + $0x184] sm:$0xf] }
  0x21   :  { %518 = vmatpush.bf16.msra.mxu0 %v3168_v3  ;;  %v3180_v12 = vor.u32 %v4406_v9, %v3177_v10  ;;  %v3137_v15 = vld [vmem:[#allocation5 + $0x1a0] sm:$0xf0]  ;;  %531 = vmatpush.bf16.msra.mxu1 %v3172_v7  ;;  %v3136_v16 = vor.u32 %v4401_v13, %v3135_v11  ;;  %v3143_v18 = vld [vmem:[#allocation5 + $0x188] sm:$0xf]  ;;  %v4398_v20 = vld [vmem:[#allocation5 + $0x18c] sm:$0xf] }
  0x22   :  { %544 = vmatpush.bf16.msra.mxu2 %v3176_v8  ;;  %v3140_v17 = vor.u32 %v4397_v14, %v3137_v15  ;;  %v4402_v19 = vld [vmem:[#allocation5 + $0x1a4] sm:$0xf0]  ;;  %v3145_v22 = vld [vmem:[#allocation5 + $0x1a8] sm:$0xf0]  ;;  %v3103_v23 = vld [vmem:[#allocation5 + $0x140] sm:$0xf] }
  0x23   :  { %557 = vmatpush.bf16.msra.mxu3 %v3180_v12  ;;  %v3144_v21 = vor.u32 %v4402_v19, %v3143_v18  ;;  %v4393_v24 = vld [vmem:[#allocation5 + $0x15c] sm:$0xf0]  ;;  %v3148_v25 = vor.u32 %v4398_v20, %v3145_v22  ;;  %v4389_v26 = vld [vmem:[#allocation5 + $0x144] sm:$0xf]  ;;  %v3111_v28 = vld [vmem:[#allocation5 + $0x148] sm:$0xf] }
  0x24   :  { %v3105_v27 = vld [vmem:[#allocation5 + $0x160] sm:$0xf0]  ;;  %v3104_v29 = vor.u32 %v4393_v24, %v3103_v23  ;;  %v4394_v30 = vld [vmem:[#allocation5 + $0x164] sm:$0xf0]  ;;  %v4390_v31 = vld [vmem:[#allocation5 + $0x14c] sm:$0xf] }
  0x25   :  { %519 = vmatpush.bf16.msra.mxu0 %v3136_v16  ;;  %v3113_v32 = vld [vmem:[#allocation5 + $0x168] sm:$0xf0]  ;;  %532 = vmatpush.bf16.msra.mxu1 %v3140_v17  ;;  %v3108_v33 = vor.u32 %v4389_v26, %v3105_v27  ;;  %v3112_v34 = vor.u32 %v4394_v30, %v3111_v28  ;;  %v3071_v35 = vld [vmem:[#allocation5 + $0x100] sm:$0xf]  ;;  %v4381_v37 = vld [vmem:[#allocation5 + $0x104] sm:$0xf] }
  0x26   :  { %545 = vmatpush.bf16.msra.mxu2 %v3144_v21  ;;  %v4385_v36 = vld [vmem:[#allocation5 + $0x11c] sm:$0xf0]  ;;  %v3116_v38 = vor.u32 %v4390_v31, %v3113_v32  ;;  %v3073_v39 = vld [vmem:[#allocation5 + $0x120] sm:$0xf0]  ;;  %v3079_v40 = vld [vmem:[#allocation5 + $0x108] sm:$0xf] }
  0x27   :  { %558 = vmatpush.bf16.msra.mxu3 %v3148_v25  ;;  %v4386_v41 = vld [vmem:[#allocation5 + $0x124] sm:$0xf0]  ;;  %v4382_v42 = vld [vmem:[#allocation5 + $0x10c] sm:$0xf]  ;;  %v3072_v44 = vor.u32 %v4385_v36, %v3071_v35  ;;  %v3076_v45 = vor.u32 %v4381_v37, %v3073_v39  ;;  %v3039_v47 = vld [vmem:[#allocation5 + $0xc0] sm:$0xf] }
  0x28   :  { %v3081_v43 = vld [vmem:[#allocation5 + $0x128] sm:$0xf0]  ;;  %v3080_v46 = vor.u32 %v4386_v41, %v3079_v40  ;;  %v4377_v48 = vld [vmem:[#allocation5 + $0xdc] sm:$0xf0]  ;;  %v4373_v49 = vld [vmem:[#allocation5 + $0xc4] sm:$0xf] }
  0x29   :  { %520 = vmatpush.bf16.msra.mxu0 %v3104_v29  ;;  %533 = vmatpush.bf16.msra.mxu1 %v3108_v33  ;;  %v3084_v50 = vor.u32 %v4382_v42, %v3081_v43  ;;  %v3041_v51 = vld [vmem:[#allocation5 + $0xe0] sm:$0xf0]  ;;  %v3047_v52 = vld [vmem:[#allocation5 + $0xc8] sm:$0xf]  ;;  %v4374_v54 = vld [vmem:[#allocation5 + $0xcc] sm:$0xf]  ;;  %v3040_v56 = vor.u32 %v4377_v48, %v3039_v47 }
  0x2a   :  { %546 = vmatpush.bf16.msra.mxu2 %v3112_v34  ;;  %v4378_v53 = vld [vmem:[#allocation5 + $0xe4] sm:$0xf0]  ;;  %v3049_v55 = vld [vmem:[#allocation5 + $0xe8] sm:$0xf0]  ;;  %v3044_v57 = vor.u32 %v4373_v49, %v3041_v51  ;;  %v3007_v59 = vld [vmem:[#allocation5 + $0x80] sm:$0xf] }
  0x2b   :  { %559 = vmatpush.bf16.msra.mxu3 %v3116_v38  ;;  %v3048_v58 = vor.u32 %v4378_v53, %v3047_v52  ;;  %v4369_v60 = vld [vmem:[#allocation5 + $0x9c] sm:$0xf0]  ;;  %v4365_v61 = vld [vmem:[#allocation5 + $0x84] sm:$0xf]  ;;  %v3052_v62 = vor.u32 %v4374_v54, %v3049_v55  ;;  %v3015_v0 = vld [vmem:[#allocation5 + $0x88] sm:$0xf] }
  0x2c   :  { %v3009_v63 = vld [vmem:[#allocation5 + $0xa0] sm:$0xf0]  ;;  %v4370_v1 = vld [vmem:[#allocation5 + $0xa4] sm:$0xf0]  ;;  %v4366_v2 = vld [vmem:[#allocation5 + $0x8c] sm:$0xf]  ;;  %v3008_v4 = vor.u32 %v4369_v60, %v3007_v59 }
  0x2d   :  { %521 = vmatpush.bf16.msra.mxu0 %v3072_v44  ;;  %534 = vmatpush.bf16.msra.mxu1 %v3076_v45  ;;  %v3017_v3 = vld [vmem:[#allocation5 + $0xa8] sm:$0xf0]  ;;  %v3012_v5 = vor.u32 %v4365_v61, %v3009_v63  ;;  %v3016_v6 = vor.u32 %v4370_v1, %v3015_v0  ;;  %v2975_v7 = vld [vmem:[#allocation5 + $0x40] sm:$0xf]  ;;  %v4357_v9 = vld [vmem:[#allocation5 + $0x44] sm:$0xf] }
  0x2e   :  { %547 = vmatpush.bf16.msra.mxu2 %v3080_v46  ;;  %v4361_v8 = vld [vmem:[#allocation5 + $0x5c] sm:$0xf0]  ;;  %v3020_v10 = vor.u32 %v4366_v2, %v3017_v3  ;;  %v2977_v11 = vld [vmem:[#allocation5 + $0x60] sm:$0xf0]  ;;  %v2983_v12 = vld [vmem:[#allocation5 + $0x48] sm:$0xf] }
  0x2f   :  { %560 = vmatpush.bf16.msra.mxu3 %v3084_v50  ;;  %v4362_v13 = vld [vmem:[#allocation5 + $0x64] sm:$0xf0]  ;;  %v4358_v14 = vld [vmem:[#allocation5 + $0x4c] sm:$0xf]  ;;  %v2976_v16 = vor.u32 %v4361_v8, %v2975_v7  ;;  %v2943_v17 = vld [vmem:[#allocation5] sm:$0xf]  ;;  %v2980_v19 = vor.u32 %v4357_v9, %v2977_v11 }
  0x30   :  { %v2985_v15 = vld [vmem:[#allocation5 + $0x68] sm:$0xf0]  ;;  %v4353_v18 = vld [vmem:[#allocation5 + $0x1c] sm:$0xf0]  ;;  %v2984_v20 = vor.u32 %v4362_v13, %v2983_v12  ;;  %v4349_v21 = vld [vmem:[#allocation5 + $0x4] sm:$0xf] }
  0x31   :  { %522 = vmatpush.bf16.msra.mxu0 %v3040_v56  ;;  %535 = vmatpush.bf16.msra.mxu1 %v3044_v57  ;;  %v2945_v22 = vld [vmem:[#allocation5 + $0x20] sm:$0xf0]  ;;  %v2951_v23 = vld [vmem:[#allocation5 + $0x8] sm:$0xf]  ;;  %v2988_v24 = vor.u32 %v4358_v14, %v2985_v15  ;;  %v4350_v26 = vld [vmem:[#allocation5 + $0xc] sm:$0xf]  ;;  %v2944_v31 = vor.u32 %v4353_v18, %v2943_v17 }
  0x32   :  { %548 = vmatpush.bf16.msra.mxu2 %v3048_v58  ;;  %v4354_v25 = vld [vmem:[#allocation5 + $0x24] sm:$0xf0]  ;;  %v2953_v27 = vld [vmem:[#allocation5 + $0x28] sm:$0xf0]  ;;  %v3183_v28 = vld [vmem:[#allocation5 + $0x1d0] sm:$0xf]  ;;  %v2948_v35 = vor.u32 %v4349_v21, %v2945_v22 }
  0x33   :  { %561 = vmatpush.bf16.msra.mxu3 %v3052_v62  ;;  %v4411_v29 = vld [vmem:[#allocation5 + $0x1ec] sm:$0xf0]  ;;  %v4407_v30 = vld [vmem:[#allocation5 + $0x1d4] sm:$0xf]  ;;  %v3191_v33 = vld [vmem:[#allocation5 + $0x1d8] sm:$0xf]  ;;  %v2952_v36 = vor.u32 %v4354_v25, %v2951_v23  ;;  %v2956_v39 = vor.u32 %v4350_v26, %v2953_v27 }
  0x34   :  { %v3185_v32 = vld [vmem:[#allocation5 + $0x1f0] sm:$0xf0]  ;;  %v4412_v34 = vld [vmem:[#allocation5 + $0x1f4] sm:$0xf0]  ;;  %v4408_v37 = vld [vmem:[#allocation5 + $0x1dc] sm:$0xf]  ;;  %v3184_v40 = vor.u32 %v4411_v29, %v3183_v28 }
  0x35   :  { %523 = vmatpush.bf16.msra.mxu0 %v3008_v4  ;;  %536 = vmatpush.bf16.msra.mxu1 %v3012_v5  ;;  %v3193_v38 = vld [vmem:[#allocation5 + $0x1f8] sm:$0xf0]  ;;  %v3188_v41 = vor.u32 %v4407_v30, %v3185_v32  ;;  %v3192_v42 = vor.u32 %v4412_v34, %v3191_v33  ;;  %v3151_v43 = vld [vmem:[#allocation5 + $0x190] sm:$0xf]  ;;  %v4399_v45 = vld [vmem:[#allocation5 + $0x194] sm:$0xf] }
  0x36   :  { %549 = vmatpush.bf16.msra.mxu2 %v3016_v6  ;;  %v4403_v44 = vld [vmem:[#allocation5 + $0x1ac] sm:$0xf0]  ;;  %v3196_v46 = vor.u32 %v4408_v37, %v3193_v38  ;;  %v3153_v47 = vld [vmem:[#allocation5 + $0x1b0] sm:$0xf0]  ;;  %v3159_v48 = vld [vmem:[#allocation5 + $0x198] sm:$0xf] }
  0x37   :  { %562 = vmatpush.bf16.msra.mxu3 %v3020_v10  ;;  %v4404_v49 = vld [vmem:[#allocation5 + $0x1b4] sm:$0xf0]  ;;  %v4964_v50 = vld [vmem:[#allocation2] sm:$0xf]  ;;  %v3152_v53 = vor.u32 %v4403_v44, %v3151_v43  ;;  %v3156_v54 = vor.u32 %v4399_v45, %v3153_v47  ;;  %v3119_v56 = vld [vmem:[#allocation5 + $0x150] sm:$0xf] }
  0x38   :  { %v4400_v51 = vld [vmem:[#allocation5 + $0x19c] sm:$0xf]  ;;  %v3160_v55 = vor.u32 %v4404_v49, %v3159_v48  ;;  %v4395_v57 = vld [vmem:[#allocation5 + $0x16c] sm:$0xf0]  ;;  %v4391_v58 = vld [vmem:[#allocation5 + $0x154] sm:$0xf] }
  0x39   :  { %524 = vmatpush.bf16.msra.mxu0 %v2976_v16  ;;  %537 = vmatpush.bf16.msra.mxu1 %v2980_v19  ;;  %v3161_v52 = vld [vmem:[#allocation5 + $0x1b8] sm:$0xf0]  ;;  %v3121_v60 = vld [vmem:[#allocation5 + $0x170] sm:$0xf0]  ;;  %v3127_v61 = vld [vmem:[#allocation5 + $0x158] sm:$0xf]  ;;  %v3120_v1 = vor.u32 %v4395_v57, %v3119_v56 }
  0x3a   :  { %550 = vmatpush.bf16.msra.mxu2 %v2984_v20  ;;  %v3164_v59 = vor.u32 %v4400_v51, %v3161_v52  ;;  %v4396_v62 = vld [vmem:[#allocation5 + $0x174] sm:$0xf0]  ;;  %v4392_v63 = vld [vmem:[#allocation5 + $0x15c] sm:$0xf]  ;;  %v3124_v2 = vor.u32 %v4391_v58, %v3121_v60  ;;  %v3087_v4 = vld [vmem:[#allocation5 + $0x110] sm:$0xf] }
  0x3b   :  { %563 = vmatpush.bf16.msra.mxu3 %v2988_v24  ;;  %v3129_v0 = vld [vmem:[#allocation5 + $0x178] sm:$0xf0]  ;;  %v3128_v3 = vor.u32 %v4396_v62, %v3127_v61  ;;  %v4387_v5 = vld [vmem:[#allocation5 + $0x12c] sm:$0xf0]  ;;  %v4383_v6 = vld [vmem:[#allocation5 + $0x114] sm:$0xf] }
  0x3c   :  { %v3132_v7 = vor.u32 %v4392_v63, %v3129_v0  ;;  %v3089_v8 = vld [vmem:[#allocation5 + $0x130] sm:$0xf0]  ;;  %v3095_v9 = vld [vmem:[#allocation5 + $0x118] sm:$0xf]  ;;  %v4384_v11 = vld [vmem:[#allocation5 + $0x11c] sm:$0xf]  ;;  %v3088_v13 = vor.u32 %v4387_v5, %v3087_v4 }
  0x3d   :  { %525 = vmatpush.bf16.msra.mxu0 %v2944_v31  ;;  %538 = vmatpush.bf16.msra.mxu1 %v2948_v35  ;;  %v4388_v10 = vld [vmem:[#allocation5 + $0x134] sm:$0xf0]  ;;  %v3097_v12 = vld [vmem:[#allocation5 + $0x138] sm:$0xf0]  ;;  %v3092_v14 = vor.u32 %v4383_v6, %v3089_v8  ;;  %v3055_v16 = vld [vmem:[#allocation5 + $0xd0] sm:$0xf] }
  0x3e   :  { %551 = vmatpush.bf16.msra.mxu2 %v2952_v36  ;;  %v3096_v15 = vor.u32 %v4388_v10, %v3095_v9  ;;  %v4379_v17 = vld [vmem:[#allocation5 + $0xec] sm:$0xf0]  ;;  %v4375_v18 = vld [vmem:[#allocation5 + $0xd4] sm:$0xf]  ;;  %v3100_v19 = vor.u32 %v4384_v11, %v3097_v12  ;;  %v3063_v21 = vld [vmem:[#allocation5 + $0xd8] sm:$0xf] }
  0x3f   :  { %564 = vmatpush.bf16.msra.mxu3 %v2956_v39  ;;  %v3057_v20 = vld [vmem:[#allocation5 + $0xf0] sm:$0xf0]  ;;  %v4380_v22 = vld [vmem:[#allocation5 + $0xf4] sm:$0xf0]  ;;  %v4376_v23 = vld [vmem:[#allocation5 + $0xdc] sm:$0xf]  ;;  %v3056_v25 = vor.u32 %v4379_v17, %v3055_v16 }
  0x40   :  { %526 = vmatmul.bf16.vlgmr.msra.gmra.mxu0 %v4964_v50  ;;  %539 = vmatmul.bf16.vlgmr.msra.gmra.mxu1 %v4964_v50  ;;  %v3065_v24 = vld [vmem:[#allocation5 + $0xf8] sm:$0xf0]  ;;  %v3060_v26 = vor.u32 %v4375_v18, %v3057_v20  ;;  %v3064_v27 = vor.u32 %v4380_v22, %v3063_v21  ;;  %v3023_v28 = vld [vmem:[#allocation5 + $0x90] sm:$0xf]  ;;  %v4367_v30 = vld [vmem:[#allocation5 + $0x94] sm:$0xf] }
  0x41   :  { %570 = vmatpush.bf16.msrb.mxu0 %v3184_v40  ;;  %583 = vmatpush.bf16.msrb.mxu1 %v3188_v41  ;;  %v4371_v29 = vld [vmem:[#allocation5 + $0xac] sm:$0xf0]  ;;  %v3068_v31 = vor.u32 %v4376_v23, %v3065_v24  ;;  %v3025_v32 = vld [vmem:[#allocation5 + $0xb0] sm:$0xf0]  ;;  %v3031_v33 = vld [vmem:[#allocation5 + $0x98] sm:$0xf] }
  0x42   :  { %596 = vmatpush.bf16.msrb.mxu2 %v3192_v42  ;;  %565 = vmatmul.bf16.vlgmr.msra.gmra.mxu3 %v4964_v50  ;;  %v4372_v34 = vld [vmem:[#allocation5 + $0xb4] sm:$0xf0]  ;;  %v4368_v35 = vld [vmem:[#allocation5 + $0x9c] sm:$0xf]  ;;  %v3024_v37 = vor.u32 %v4371_v29, %v3023_v28  ;;  %v3028_v38 = vor.u32 %v4367_v30, %v3025_v32  ;;  %v2991_v40 = vld [vmem:[#allocation5 + $0x50] sm:$0xf] }
  0x43   :  { %609 = vmatpush.bf16.msrb.mxu3 %v3196_v46  ;;  %552 = vmatmul.bf16.vlgmr.msra.gmra.mxu2 %v4964_v50  ;;  %v3033_v36 = vld [vmem:[#allocation5 + $0xb8] sm:$0xf0]  ;;  %v3032_v39 = vor.u32 %v4372_v34, %v3031_v33  ;;  %v4363_v41 = vld [vmem:[#allocation5 + $0x6c] sm:$0xf0]  ;;  %v4359_v42 = vld [vmem:[#allocation5 + $0x54] sm:$0xf] }
  0x44   :  { %v3036_v43 = vor.u32 %v4368_v35, %v3033_v36  ;;  %v2993_v44 = vld [vmem:[#allocation5 + $0x70] sm:$0xf0]  ;;  %v2999_v45 = vld [vmem:[#allocation5 + $0x58] sm:$0xf]  ;;  %v4360_v47 = vld [vmem:[#allocation5 + $0x5c] sm:$0xf]  ;;  %v2992_v49 = vor.u32 %v4363_v41, %v2991_v40 }
  0x45   :  { %571 = vmatpush.bf16.msrb.mxu0 %v3152_v53  ;;  %584 = vmatpush.bf16.msrb.mxu1 %v3156_v54  ;;  %v4364_v46 = vld [vmem:[#allocation5 + $0x74] sm:$0xf0]  ;;  %v3001_v48 = vld [vmem:[#allocation5 + $0x78] sm:$0xf0]  ;;  %v2959_v51 = vld [vmem:[#allocation5 + $0x10] sm:$0xf]  ;;  %v2996_v52 = vor.u32 %v4359_v42, %v2993_v44 }
  0x46   :  { %597 = vmatpush.bf16.msrb.mxu2 %v3160_v55  ;;  %v3000_v53 = vor.u32 %v4364_v46, %v2999_v45  ;;  %v4355_v54 = vld [vmem:[#allocation5 + $0x2c] sm:$0xf0]  ;;  %v4351_v55 = vld [vmem:[#allocation5 + $0x14] sm:$0xf]  ;;  %v3004_v57 = vor.u32 %v4360_v47, %v3001_v48  ;;  %v2967_v58 = vld [vmem:[#allocation5 + $0x18] sm:$0xf] }
  0x47   :  { %610 = vmatpush.bf16.msrb.mxu3 %v3164_v59  ;;  %v2961_v56 = vld [vmem:[#allocation5 + $0x30] sm:$0xf0]  ;;  %v4356_v59 = vld [vmem:[#allocation5 + $0x34] sm:$0xf0]  ;;  %v4352_v60 = vld [vmem:[#allocation5 + $0x1c] sm:$0xf]  ;;  %v2960_v0 = vor.u32 %v4355_v54, %v2959_v51 }
  0x48   :  { %v2969_v61 = vld [vmem:[#allocation5 + $0x38] sm:$0xf0]  ;;  %v3311_v62 = vld [vmem:[#allocation8 + $0xe0] sm:$0xf]  ;;  %v4443_v63 = vld [vmem:[#allocation8 + $0xec] sm:$0xf0]  ;;  %v2968_v4 = vor.u32 %v4356_v59, %v2967_v58 }
  0x49   :  { %572 = vmatpush.bf16.msrb.mxu0 %v3120_v1  ;;  %585 = vmatpush.bf16.msrb.mxu1 %v3124_v2  ;;  %v3439_v1 = vld [vmem:[#allocation8 + $0x1e0] sm:$0xf]  ;;  %v4475_v2 = vld [vmem:[#allocation8 + $0x1ec] sm:$0xf0]  ;;  %v2972_v5 = vor.u32 %v4352_v60, %v2969_v61  ;;  %v3312_v6 = vor.u32 %v4443_v63, %v3311_v62  ;;  %s4905_s10 = smov [#allocation13]   ;;  %s2928_s14 = sshll.u32 %s5075_s7, 4  ;;  %s2929_s14 = int_to_ptr.hbm [resolvable:$true] %s2928_s14 }
  0x4a   :  { %598 = vmatpush.bf16.msrb.mxu2 %v3128_v3  ;;  %v2964_v3 = vor.u32 %v4351_v55, %v2961_v56  ;;  %v3567_v8 = vld [vmem:[#allocation8 + $0x2e0] sm:$0xf]  ;;  %v4507_v9 = vld [vmem:[#allocation8 + $0x2ec] sm:$0xf0]  ;;  %v3440_v10 = vor.u32 %v4475_v2, %v3439_v1  ;;  %s2926_s11 = sshll.u32 %s4905_s10, 4  ;;  %s2927_s11 = int_to_ptr.vmem [resolvable:$true] %s2926_s11 }
  0x4b   :  { %611 = vmatpush.bf16.msrb.mxu3 %v3132_v7  ;;  %v3295_v7 = vld [vmem:[#allocation8 + $0xc0] sm:$0xf]  ;;  %v4439_v11 = vld [vmem:[#allocation8 + $0xcc] sm:$0xf0]  ;;  %v3568_v16 = vor.u32 %v4507_v9, %v3567_v8 }
  0x4c   :  { %v3695_v12 = vld [vmem:[#allocation8 + $0x3e0] sm:$0xf]  ;;  %v3296_v17 = vor.u32 %v4439_v11, %v3295_v7  ;;  %v4503_v21 = vld [vmem:[#allocation8 + $0x2cc] sm:$0xf0] }
  0x4d   :  { %573 = vmatpush.bf16.msrb.mxu0 %v3088_v13  ;;  %586 = vmatpush.bf16.msrb.mxu1 %v3092_v14  ;;  %v4539_v13 = vld [vmem:[#allocation8 + $0x3ec] sm:$0xf0]  ;;  %v3423_v14 = vld [vmem:[#allocation8 + $0x1c0] sm:$0xf] }
  0x4e   :  { %599 = vmatpush.bf16.msrb.mxu2 %v3096_v15  ;;  %v4471_v15 = vld [vmem:[#allocation8 + $0x1cc] sm:$0xf0]  ;;  %v3696_v18 = vor.u32 %v4539_v13, %v3695_v12  ;;  %v3551_v20 = vld [vmem:[#allocation8 + $0x2c0] sm:$0xf] }
  0x4f   :  { %612 = vmatpush.bf16.msrb.mxu3 %v3100_v19  ;;  %v3279_v19 = vld [vmem:[#allocation8 + $0xa0] sm:$0xf]  ;;  %v3424_v22 = vor.u32 %v4471_v15, %v3423_v14  ;;  %v4435_v23 = vld [vmem:[#allocation8 + $0xac] sm:$0xf0]  ;;  %v3552_v28 = vor.u32 %v4503_v21, %v3551_v20 }
  0x50   :  { %v3679_v24 = vld [vmem:[#allocation8 + $0x3c0] sm:$0xf]  ;;  %v3280_v29 = vor.u32 %v4435_v23, %v3279_v19  ;;  %v4499_v33 = vld [vmem:[#allocation8 + $0x2ac] sm:$0xf0] }
  0x51   :  { %574 = vmatpush.bf16.msrb.mxu0 %v3056_v25  ;;  %587 = vmatpush.bf16.msrb.mxu1 %v3060_v26  ;;  %v4535_v25 = vld [vmem:[#allocation8 + $0x3cc] sm:$0xf0]  ;;  %v3407_v26 = vld [vmem:[#allocation8 + $0x1a0] sm:$0xf] }
  0x52   :  { %600 = vmatpush.bf16.msrb.mxu2 %v3064_v27  ;;  %v4467_v27 = vld [vmem:[#allocation8 + $0x1ac] sm:$0xf0]  ;;  %v3680_v30 = vor.u32 %v4535_v25, %v3679_v24  ;;  %v3535_v32 = vld [vmem:[#allocation8 + $0x2a0] sm:$0xf] }
  0x53   :  { %613 = vmatpush.bf16.msrb.mxu3 %v3068_v31  ;;  %v3263_v31 = vld [vmem:[#allocation8 + $0x80] sm:$0xf]  ;;  %v3408_v34 = vor.u32 %v4467_v27, %v3407_v26  ;;  %v4431_v35 = vld [vmem:[#allocation8 + $0x8c] sm:$0xf0]  ;;  %v3536_v40 = vor.u32 %v4499_v33, %v3535_v32 }
  0x54   :  { %v3663_v36 = vld [vmem:[#allocation8 + $0x3a0] sm:$0xf]  ;;  %v4495_v44 = vld [vmem:[#allocation8 + $0x28c] sm:$0xf0] }
  0x55   :  { %575 = vmatpush.bf16.msrb.mxu0 %v3024_v37  ;;  %588 = vmatpush.bf16.msrb.mxu1 %v3028_v38  ;;  %v4531_v37 = vld [vmem:[#allocation8 + $0x3ac] sm:$0xf0]  ;;  %v3391_v38 = vld [vmem:[#allocation8 + $0x180] sm:$0xf] }
  0x56   :  { %601 = vmatpush.bf16.msrb.mxu2 %v3032_v39  ;;  %v4463_v39 = vld [vmem:[#allocation8 + $0x18c] sm:$0xf0]  ;;  %v3247_v41 = vld [vmem:[#allocation8 + $0x60] sm:$0xf]  ;;  %v3664_v42 = vor.u32 %v4531_v37, %v3663_v36 }
  0x57   :  { %614 = vmatpush.bf16.msrb.mxu3 %v3036_v43  ;;  %v3519_v43 = vld [vmem:[#allocation8 + $0x280] sm:$0xf]  ;;  %v3392_v45 = vor.u32 %v4463_v39, %v3391_v38  ;;  %v4427_v46 = vld [vmem:[#allocation8 + $0x6c] sm:$0xf0] }
  0x58   :  { %v3647_v47 = vld [vmem:[#allocation8 + $0x380] sm:$0xf]  ;;  %v4527_v48 = vld [vmem:[#allocation8 + $0x38c] sm:$0xf0] }
  0x59   :  { %576 = vmatpush.bf16.msrb.mxu0 %v2992_v49  ;;  %589 = vmatpush.bf16.msrb.mxu1 %v2996_v52  ;;  %v3375_v49 = vld [vmem:[#allocation8 + $0x160] sm:$0xf]  ;;  %v4459_v51 = vld [vmem:[#allocation8 + $0x16c] sm:$0xf0]  ;;  %v3520_v52 = vor.u32 %v4495_v44, %v3519_v43  ;;  %v3648_v54 = vor.u32 %v4527_v48, %v3647_v47 }
  0x5a   :  { %602 = vmatpush.bf16.msrb.mxu2 %v3000_v53  ;;  %v3248_v53 = vor.u32 %v4427_v46, %v3247_v41  ;;  %v3231_v55 = vld [vmem:[#allocation8 + $0x40] sm:$0xf]  ;;  %v3376_v58 = vor.u32 %v4459_v51, %v3375_v49  ;;  %v4423_v59 = vld [vmem:[#allocation8 + $0x4c] sm:$0xf0] }
  0x5b   :  { %615 = vmatpush.bf16.msrb.mxu3 %v3004_v57  ;;  %v3503_v56 = vld [vmem:[#allocation8 + $0x260] sm:$0xf]  ;;  %v4491_v57 = vld [vmem:[#allocation8 + $0x26c] sm:$0xf0]  ;;  %v3232_v1 = vor.u32 %v4423_v59, %v3231_v55 }
  0x5c   :  { %v3631_v60 = vld [vmem:[#allocation8 + $0x360] sm:$0xf]  ;;  %v4523_v61 = vld [vmem:[#allocation8 + $0x36c] sm:$0xf0] }
  0x5d   :  { %577 = vmatpush.bf16.msrb.mxu0 %v2960_v0  ;;  %590 = vmatpush.bf16.msrb.mxu1 %v2964_v3  ;;  %v3359_v62 = vld [vmem:[#allocation8 + $0x140] sm:$0xf]  ;;  %v4455_v63 = vld [vmem:[#allocation8 + $0x14c] sm:$0xf0]  ;;  %v3504_v0 = vor.u32 %v4491_v57, %v3503_v56  ;;  %v3632_v2 = vor.u32 %v4523_v61, %v3631_v60 }
  0x5e   :  { %603 = vmatpush.bf16.msrb.mxu2 %v2968_v4  ;;  %v3215_v3 = vld [vmem:[#allocation8 + $0x20] sm:$0xf]  ;;  %v4419_v7 = vld [vmem:[#allocation8 + $0x2c] sm:$0xf0] }
  0x5f   :  { %616 = vmatpush.bf16.msrb.mxu3 %v2972_v5  ;;  %v3487_v4 = vld [vmem:[#allocation8 + $0x240] sm:$0xf]  ;;  %v4487_v5 = vld [vmem:[#allocation8 + $0x24c] sm:$0xf0]  ;;  %v3216_v14 = vor.u32 %v4419_v7, %v3215_v3 }
  0x60   :  { %578 = vmatmul.bf16.vlgmr.msrb.gmra.mxu0 %v4964_v50  ;;  %591 = vmatmul.bf16.vlgmr.msrb.gmra.mxu1 %v4964_v50  ;;  %v3615_v8 = vld [vmem:[#allocation8 + $0x340] sm:$0xf]  ;;  %v4519_v9 = vld [vmem:[#allocation8 + $0x34c] sm:$0xf0]  ;;  %v3488_v12 = vor.u32 %v4487_v5, %v3487_v4 }
  0x61   :  { %2184 = vmatpush.bf16.msra.mxu0 %v3312_v6  ;;  %2197 = vmatpush.bf16.msra.mxu1 %v3440_v10  ;;  %v3360_v6 = vor.u32 %v4455_v63, %v3359_v62  ;;  %v3343_v10 = vld [vmem:[#allocation8 + $0x120] sm:$0xf]  ;;  %v4451_v11 = vld [vmem:[#allocation8 + $0x12c] sm:$0xf0]  ;;  %v3616_v15 = vor.u32 %v4519_v9, %v3615_v8 }
  0x62   :  { %604 = vmatmul.bf16.vlgmr.msrb.gmra.mxu2 %v4964_v50  ;;  %617 = vmatmul.bf16.vlgmr.msrb.gmra.mxu3 %v4964_v50  ;;  %v3264_v50 = vor.u32 %v4431_v35, %v3263_v31  ;;  %v3199_v13 = vld [vmem:[#allocation8] sm:$0xf]  ;;  %v3344_v19 = vor.u32 %v4451_v11, %v3343_v10  ;;  %v4447_v23 = vld [vmem:[#allocation8 + $0x10c] sm:$0xf0] }
  0x63   :  { %2210 = vmatpush.bf16.msra.mxu2 %v3568_v16  ;;  %2223 = vmatpush.bf16.msra.mxu3 %v3696_v18  ;;  %v4415_v16 = vld [vmem:[#allocation8 + $0xc] sm:$0xf0]  ;;  %v3327_v20 = vld [vmem:[#allocation8 + $0x100] sm:$0xf] }
  0x64   :  { %v4483_v18 = vld [vmem:[#allocation8 + $0x22c] sm:$0xf0]  ;;  %v3599_v21 = vld [vmem:[#allocation8 + $0x320] sm:$0xf]  ;;  %v3328_v35 = vor.u32 %v4447_v23, %v3327_v20 }
  0x65   :  { %2185 = vmatpush.bf16.msra.mxu0 %v3296_v17  ;;  %2198 = vmatpush.bf16.msra.mxu1 %v3424_v22  ;;  %v3471_v17 = vld [vmem:[#allocation8 + $0x220] sm:$0xf]  ;;  %v4515_v22 = vld [vmem:[#allocation8 + $0x32c] sm:$0xf0] }
  0x66   :  { %v3823_v24 = vld [vmem:[#allocation8 + $0x4e0] sm:$0xf]  ;;  %v4571_v25 = vld [vmem:[#allocation8 + $0x4ec] sm:$0xf0] }
  0x67   :  { %2211 = vmatpush.bf16.msra.mxu2 %v3552_v28  ;;  %2224 = vmatpush.bf16.msra.mxu3 %v3680_v30  ;;  %v3951_v26 = vld [vmem:[#allocation8 + $0x5e0] sm:$0xf]  ;;  %v4603_v27 = vld [vmem:[#allocation8 + $0x5ec] sm:$0xf0]  ;;  %v3472_v28 = vor.u32 %v4483_v18, %v3471_v17  ;;  %v3600_v30 = vor.u32 %v4515_v22, %v3599_v21  ;;  %v3824_v36 = vor.u32 %v4571_v25, %v3823_v24 }
  0x68   :  { %v3807_v31 = vld [vmem:[#allocation8 + $0x4c0] sm:$0xf]  ;;  %v4479_v33 = vld [vmem:[#allocation8 + $0x20c] sm:$0xf0] }
  0x69   :  { %2186 = vmatpush.bf16.msra.mxu0 %v3280_v29  ;;  %2199 = vmatpush.bf16.msra.mxu1 %v3408_v34  ;;  %v3200_v29 = vor.u32 %v4415_v16, %v3199_v13  ;;  %v3455_v32 = vld [vmem:[#allocation8 + $0x200] sm:$0xf]  ;;  %v4511_v37 = vld [vmem:[#allocation8 + $0x30c] sm:$0xf0] }
  0x6a   :  { %v3583_v34 = vld [vmem:[#allocation8 + $0x300] sm:$0xf]  ;;  %v4635_v39 = vld [vmem:[#allocation8 + $0x6ec] sm:$0xf0] }
  0x6b   :  { %2212 = vmatpush.bf16.msra.mxu2 %v3536_v40  ;;  %2225 = vmatpush.bf16.msra.mxu3 %v3664_v42  ;;  %v4079_v38 = vld [vmem:[#allocation8 + $0x6e0] sm:$0xf]  ;;  %v3952_v40 = vor.u32 %v4603_v27, %v3951_v26  ;;  %v4567_v41 = vld [vmem:[#allocation8 + $0x4cc] sm:$0xf0]  ;;  %v3584_v46 = vor.u32 %v4511_v37, %v3583_v34 }
  0x6c   :  { %v4667_v42 = vld [vmem:[#allocation8 + $0x7ec] sm:$0xf0]  ;;  %v3935_v43 = vld [vmem:[#allocation8 + $0x5c0] sm:$0xf]  ;;  %v4080_v47 = vor.u32 %v4635_v39, %v4079_v38  ;;  %v3808_v48 = vor.u32 %v4567_v41, %v3807_v31 }
  0x6d   :  { %2187 = vmatpush.bf16.msra.mxu0 %v3264_v50  ;;  %2200 = vmatpush.bf16.msra.mxu1 %v3392_v45  ;;  %v4207_v50 = vld [vmem:[#allocation8 + $0x7e0] sm:$0xf]  ;;  %v4599_v44 = vld [vmem:[#allocation8 + $0x5cc] sm:$0xf0]  ;;  %v3456_v45 = vor.u32 %v4479_v33, %v3455_v32 }
  0x6e   :  { %v4208_v49 = vor.u32 %v4667_v42, %v4207_v50  ;;  %v3791_v51 = vld [vmem:[#allocation8 + $0x4a0] sm:$0xf]  ;;  %v4563_v55 = vld [vmem:[#allocation8 + $0x4ac] sm:$0xf0] }
  0x6f   :  { %2213 = vmatpush.bf16.msra.mxu2 %v3520_v52  ;;  %2226 = vmatpush.bf16.msra.mxu3 %v3648_v54  ;;  %v4063_v52 = vld [vmem:[#allocation8 + $0x6c0] sm:$0xf]  ;;  %v3936_v54 = vor.u32 %v4599_v44, %v3935_v43  ;;  %v4663_v57 = vld [vmem:[#allocation8 + $0x7cc] sm:$0xf0]  ;;  %v3792_v61 = vor.u32 %v4563_v55, %v3791_v51 }
  0x70   :  { %v4191_v56 = vld [vmem:[#allocation8 + $0x7c0] sm:$0xf]  ;;  %v4595_v59 = vld [vmem:[#allocation8 + $0x5ac] sm:$0xf0] }
  0x71   :  { %2188 = vmatpush.bf16.msra.mxu0 %v3248_v53  ;;  %2201 = vmatpush.bf16.msra.mxu1 %v3376_v58  ;;  %v4631_v53 = vld [vmem:[#allocation8 + $0x6cc] sm:$0xf0]  ;;  %v3919_v58 = vld [vmem:[#allocation8 + $0x5a0] sm:$0xf]  ;;  %v4192_v62 = vor.u32 %v4663_v57, %v4191_v56 }
  0x72   :  { %v4064_v60 = vor.u32 %v4631_v53, %v4063_v52  ;;  %v3775_v63 = vld [vmem:[#allocation8 + $0x480] sm:$0xf]  ;;  %v4559_v3 = vld [vmem:[#allocation8 + $0x48c] sm:$0xf0] }
  0x73   :  { %2214 = vmatpush.bf16.msra.mxu2 %v3504_v0  ;;  %2227 = vmatpush.bf16.msra.mxu3 %v3632_v2  ;;  %v4047_v0 = vld [vmem:[#allocation8 + $0x6a0] sm:$0xf]  ;;  %v3920_v2 = vor.u32 %v4595_v59, %v3919_v58  ;;  %v4659_v5 = vld [vmem:[#allocation8 + $0x7ac] sm:$0xf0]  ;;  %v3776_v9 = vor.u32 %v4559_v3, %v3775_v63 }
  0x74   :  { %v4175_v4 = vld [vmem:[#allocation8 + $0x7a0] sm:$0xf]  ;;  %v4591_v7 = vld [vmem:[#allocation8 + $0x58c] sm:$0xf0] }
  0x75   :  { %2189 = vmatpush.bf16.msra.mxu0 %v3232_v1  ;;  %2202 = vmatpush.bf16.msra.mxu1 %v3360_v6  ;;  %v4627_v1 = vld [vmem:[#allocation8 + $0x6ac] sm:$0xf0]  ;;  %v3903_v6 = vld [vmem:[#allocation8 + $0x580] sm:$0xf]  ;;  %v4176_v10 = vor.u32 %v4659_v5, %v4175_v4 }
  0x76   :  { %v4048_v8 = vor.u32 %v4627_v1, %v4047_v0  ;;  %v3759_v11 = vld [vmem:[#allocation8 + $0x460] sm:$0xf]  ;;  %v4623_v13 = vld [vmem:[#allocation8 + $0x68c] sm:$0xf0] }
  0x77   :  { %2215 = vmatpush.bf16.msra.mxu2 %v3488_v12  ;;  %2228 = vmatpush.bf16.msra.mxu3 %v3616_v15  ;;  %v4031_v12 = vld [vmem:[#allocation8 + $0x680] sm:$0xf]  ;;  %v4555_v15 = vld [vmem:[#allocation8 + $0x46c] sm:$0xf0] }
  0x78   :  { %v4159_v16 = vld [vmem:[#allocation8 + $0x780] sm:$0xf]  ;;  %v4655_v17 = vld [vmem:[#allocation8 + $0x78c] sm:$0xf0]  ;;  %v4032_v20 = vor.u32 %v4623_v13, %v4031_v12  ;;  %v3760_v21 = vor.u32 %v4555_v15, %v3759_v11  ;;  %v4473_v11 = vld [vmem:[#allocation8 + $0x1e4] sm:$0xf] }
  0x79   :  { %2190 = vmatpush.bf16.msra.mxu0 %v3216_v14  ;;  %2203 = vmatpush.bf16.msra.mxu1 %v3344_v19  ;;  %v3904_v14 = vor.u32 %v4591_v7, %v3903_v6  ;;  %v3887_v18 = vld [vmem:[#allocation8 + $0x560] sm:$0xf]  ;;  %v4587_v19 = vld [vmem:[#allocation8 + $0x56c] sm:$0xf0]  ;;  %v4160_v22 = vor.u32 %v4655_v17, %v4159_v16  ;;  %v3441_v12 = vld [vmem:[#allocation8 + $0x1f0] sm:$0xf0] }
  0x7a   :  { %v3888_v23 = vor.u32 %v4587_v19, %v3887_v18  ;;  %v3743_v24 = vld [vmem:[#allocation8 + $0x440] sm:$0xf]  ;;  %v4551_v25 = vld [vmem:[#allocation8 + $0x44c] sm:$0xf0]  ;;  %v3444_v19 = vor.u32 %v4473_v11, %v3441_v12  ;;  %v4493_v11 = vld [vmem:[#allocation8 + $0x284] sm:$0xf] }
  0x7b   :  { %2216 = vmatpush.bf16.msra.mxu2 %v3472_v28  ;;  %2229 = vmatpush.bf16.msra.mxu3 %v3600_v30  ;;  %v3871_v26 = vld [vmem:[#allocation8 + $0x540] sm:$0xf]  ;;  %v4583_v27 = vld [vmem:[#allocation8 + $0x54c] sm:$0xf0]  ;;  %v3744_v28 = vor.u32 %v4551_v25, %v3743_v24  ;;  %v3425_v24 = vld [vmem:[#allocation8 + $0x1d0] sm:$0xf0] }
  0x7c   :  { %v4015_v30 = vld [vmem:[#allocation8 + $0x660] sm:$0xf]  ;;  %v4619_v31 = vld [vmem:[#allocation8 + $0x66c] sm:$0xf0]  ;;  %v3521_v12 = vld [vmem:[#allocation8 + $0x290] sm:$0xf0] }
  0x7d   :  { %2191 = vmatpush.bf16.msra.mxu0 %v3200_v29  ;;  %2204 = vmatpush.bf16.msra.mxu1 %v3328_v35  ;;  %v3872_v29 = vor.u32 %v4583_v27, %v3871_v26  ;;  %v4143_v32 = vld [vmem:[#allocation8 + $0x760] sm:$0xf]  ;;  %v4016_v33 = vor.u32 %v4619_v31, %v4015_v30  ;;  %v4651_v34 = vld [vmem:[#allocation8 + $0x76c] sm:$0xf0]  ;;  %v4505_v30 = vld [vmem:[#allocation8 + $0x2e4] sm:$0xf] }
  0x7e   :  { %v4144_v35 = vor.u32 %v4651_v34, %v4143_v32  ;;  %v4547_v37 = vld [vmem:[#allocation8 + $0x42c] sm:$0xf0]  ;;  %v3855_v39 = vld [vmem:[#allocation8 + $0x520] sm:$0xf]  ;;  %v3569_v31 = vld [vmem:[#allocation8 + $0x2f0] sm:$0xf0] }
  0x7f   :  { %2217 = vmatpush.bf16.msra.mxu2 %v3456_v45  ;;  %2230 = vmatpush.bf16.msra.mxu3 %v3584_v46  ;;  %v3999_v50 = vld [vmem:[#allocation8 + $0x640] sm:$0xf]  ;;  %v4615_v42 = vld [vmem:[#allocation8 + $0x64c] sm:$0xf0]  ;;  %v4537_v32 = vld [vmem:[#allocation8 + $0x3e4] sm:$0xf] }
  0x80   :  { %v4127_v43 = vld [vmem:[#allocation8 + $0x740] sm:$0xf]  ;;  %v4000_v44 = vor.u32 %v4615_v42, %v3999_v50  ;;  %v4647_v45 = vld [vmem:[#allocation8 + $0x74c] sm:$0xf0]  ;;  %v3572_v42 = vor.u32 %v4505_v30, %v3569_v31  ;;  %v4417_v30 = vld [vmem:[#allocation8 + $0x24] sm:$0xf] }
  0x81   :  { %2236 = vmatpush.bf16.msrb.mxu0 %v3824_v36  ;;  %2249 = vmatpush.bf16.msrb.mxu1 %v3952_v40  ;;  %v3727_v36 = vld [vmem:[#allocation8 + $0x420] sm:$0xf]  ;;  %v4579_v40 = vld [vmem:[#allocation8 + $0x52c] sm:$0xf0]  ;;  %v4128_v46 = vor.u32 %v4647_v45, %v4127_v43  ;;  %v3217_v31 = vld [vmem:[#allocation8 + $0x30] sm:$0xf0] }
  0x82   :  { %v3728_v38 = vor.u32 %v4547_v37, %v3727_v36  ;;  %v3856_v41 = vor.u32 %v4579_v40, %v3855_v39  ;;  %v4575_v52 = vld [vmem:[#allocation8 + $0x50c] sm:$0xf0]  ;;  %v4111_v57 = vld [vmem:[#allocation8 + $0x720] sm:$0xf]  ;;  %v3697_v36 = vld [vmem:[#allocation8 + $0x3f0] sm:$0xf0] }
  0x83   :  { %2262 = vmatpush.bf16.msrb.mxu2 %v4080_v47  ;;  %2275 = vmatpush.bf16.msrb.mxu3 %v4208_v49  ;;  %v3711_v47 = vld [vmem:[#allocation8 + $0x400] sm:$0xf]  ;;  %v4611_v55 = vld [vmem:[#allocation8 + $0x62c] sm:$0xf0]  ;;  %v4433_v37 = vld [vmem:[#allocation8 + $0xa4] sm:$0xf] }
  0x84   :  { %v3839_v49 = vld [vmem:[#allocation8 + $0x500] sm:$0xf]  ;;  %v4643_v58 = vld [vmem:[#allocation8 + $0x72c] sm:$0xf0]  ;;  %v4465_v40 = vld [vmem:[#allocation8 + $0x1a4] sm:$0xf] }
  0x85   :  { %2237 = vmatpush.bf16.msrb.mxu0 %v3808_v48  ;;  %2250 = vmatpush.bf16.msrb.mxu1 %v3936_v54  ;;  %v4543_v48 = vld [vmem:[#allocation8 + $0x40c] sm:$0xf0]  ;;  %v3840_v53 = vor.u32 %v4575_v52, %v3839_v49  ;;  %v3983_v54 = vld [vmem:[#allocation8 + $0x620] sm:$0xf]  ;;  %v4112_v59 = vor.u32 %v4643_v58, %v4111_v57  ;;  %v3681_v52 = vld [vmem:[#allocation8 + $0x3d0] sm:$0xf0] }
  0x86   :  { %v3712_v51 = vor.u32 %v4543_v48, %v3711_v47  ;;  %v3984_v56 = vor.u32 %v4611_v55, %v3983_v54  ;;  %v4095_v63 = vld [vmem:[#allocation8 + $0x700] sm:$0xf]  ;;  %v4639_v0 = vld [vmem:[#allocation8 + $0x70c] sm:$0xf0]  ;;  %v3553_v47 = vld [vmem:[#allocation8 + $0x2d0] sm:$0xf0] }
  0x87   :  { %2263 = vmatpush.bf16.msrb.mxu2 %v4064_v60  ;;  %2276 = vmatpush.bf16.msrb.mxu3 %v4192_v62  ;;  %v3967_v60 = vld [vmem:[#allocation8 + $0x600] sm:$0xf]  ;;  %v4096_v1 = vor.u32 %v4639_v0, %v4095_v63  ;;  %v4533_v48 = vld [vmem:[#allocation8 + $0x3c4] sm:$0xf]  ;;  %v3265_v54 = vld [vmem:[#allocation8 + $0x90] sm:$0xf0] }
  0x88   :  { %v4461_v55 = vld [vmem:[#allocation8 + $0x184] sm:$0xf]  ;;  %v3537_v63 = vld [vmem:[#allocation8 + $0x2b0] sm:$0xf0] }
  0x89   :  { %2238 = vmatpush.bf16.msrb.mxu0 %v3792_v61  ;;  %2251 = vmatpush.bf16.msrb.mxu1 %v3920_v2  ;;  %v4607_v61 = vld [vmem:[#allocation8 + $0x60c] sm:$0xf0]  ;;  %v4974_v2 = vld [vmem:[#allocation7] sm:$0xff]  ;;  %v4529_v0 = vld [vmem:[#allocation8 + $0x3a4] sm:$0xf] }
  0x8a   :  { %v3968_v62 = vor.u32 %v4607_v61, %v3967_v60  ;;  %v182_v3 = vperm.slane %v4974_v2, 0  ;;  %v183_v4 = vperm.slane %v4974_v2, 1  ;;  %v184_v15 = vperm.slane %v4974_v2, 2 }
  0x8b   :  { %2264 = vmatpush.bf16.msrb.mxu2 %v4048_v8  ;;  %2277 = vmatpush.bf16.msrb.mxu3 %v4176_v10  ;;  %v4441_v8 = vld [vmem:[#allocation8 + $0xe4] sm:$0xf]  ;;  %v185_v18 = vperm.slane %v4974_v2, 3  ;;  %v3684_v60 = vor.u32 %v4533_v48, %v3681_v52  ;;  %v3329_v52 = vld [vmem:[#allocation8 + $0x110] sm:$0xf0] }
  0x8d   :  { %2239 = vmatpush.bf16.msrb.mxu0 %v3776_v9  ;;  %2252 = vmatpush.bf16.msrb.mxu1 %v3904_v14  ;;  %v3313_v9 = vld [vmem:[#allocation8 + $0xf0] sm:$0xf0] }
  0x8e   :  { %v3316_v16 = vor.u32 %v4441_v8, %v3313_v9 }
  0x8f   :  { %2265 = vmatpush.bf16.msrb.mxu2 %v4032_v20  ;;  %2278 = vmatpush.bf16.msrb.mxu3 %v4160_v22  ;;  %v4437_v20 = vld [vmem:[#allocation8 + $0xc4] sm:$0xf] }
  0x91   :  { %2240 = vmatpush.bf16.msrb.mxu0 %v3760_v21  ;;  %2253 = vmatpush.bf16.msrb.mxu1 %v3888_v23  ;;  %v3297_v21 = vld [vmem:[#allocation8 + $0xd0] sm:$0xf0]  ;;  %v4469_v23 = vld [vmem:[#allocation8 + $0x1c4] sm:$0xf] }
  0x93   :  { %2266 = vmatpush.bf16.msrb.mxu2 %v4016_v33  ;;  %2279 = vmatpush.bf16.msrb.mxu3 %v4144_v35  ;;  %v3428_v35 = vor.u32 %v4469_v23, %v3425_v24 }
  0x95   :  { %2241 = vmatpush.bf16.msrb.mxu0 %v3744_v28  ;;  %2254 = vmatpush.bf16.msrb.mxu1 %v3872_v29  ;;  %v3300_v29 = vor.u32 %v4437_v20, %v3297_v21  ;;  %v3361_v20 = vld [vmem:[#allocation8 + $0x150] sm:$0xf0]  ;;  %v3524_v21 = vor.u32 %v4493_v11, %v3521_v12  ;;  %v4565_v12 = vld [vmem:[#allocation8 + $0x4c4] sm:$0xf] }
  0x97   :  { %2267 = vmatpush.bf16.msrb.mxu2 %v4000_v44  ;;  %2280 = vmatpush.bf16.msrb.mxu3 %v4128_v46  ;;  %v3700_v44 = vor.u32 %v4537_v32, %v3697_v36  ;;  %v4501_v46 = vld [vmem:[#allocation8 + $0x2c4] sm:$0xf]  ;;  %v186_v32 = vperm.slane %v4974_v2, 4 }
  0x98   :  { %v3556_v58 = vor.u32 %v4501_v46, %v3553_v47  ;;  %v3201_v46 = vld [vmem:[#allocation8 + $0x10] sm:$0xf0] }
  0x99   :  { %2242 = vmatpush.bf16.msrb.mxu0 %v3728_v38  ;;  %2255 = vmatpush.bf16.msrb.mxu1 %v3856_v41  ;;  %v3281_v38 = vld [vmem:[#allocation8 + $0xb0] sm:$0xf0] }
  0x9a   :  { %v3409_v41 = vld [vmem:[#allocation8 + $0x1b0] sm:$0xf0]  ;;  %v3284_v45 = vor.u32 %v4433_v37, %v3281_v38  ;;  %v3220_v38 = vor.u32 %v4417_v30, %v3217_v31  ;;  %v4665_v31 = vld [vmem:[#allocation8 + $0x7e4] sm:$0xf] }
  0x9b   :  { %2268 = vmatpush.bf16.msrb.mxu2 %v3984_v56  ;;  %2281 = vmatpush.bf16.msrb.mxu3 %v4112_v59  ;;  %v3393_v56 = vld [vmem:[#allocation8 + $0x190] sm:$0xf0] }
  0x9c   :  { %v4081_v30 = vld [vmem:[#allocation8 + $0x6f0] sm:$0xf0] }
  0x9d   :  { %2243 = vmatpush.bf16.msrb.mxu0 %v3712_v51  ;;  %2256 = vmatpush.bf16.msrb.mxu1 %v3840_v53  ;;  %v3412_v51 = vor.u32 %v4465_v40, %v3409_v41  ;;  %v4429_v53 = vld [vmem:[#allocation8 + $0x84] sm:$0xf]  ;;  %v3489_v40 = vld [vmem:[#allocation8 + $0x250] sm:$0xf0] }
  0x9e   :  { %v3268_v61 = vor.u32 %v4429_v53, %v3265_v54  ;;  %v4517_v41 = vld [vmem:[#allocation8 + $0x344] sm:$0xf] }
  0x9f   :  { %2269 = vmatpush.bf16.msrb.mxu2 %v3968_v62  ;;  %2282 = vmatpush.bf16.msrb.mxu3 %v4096_v1  ;;  %v4497_v62 = vld [vmem:[#allocation8 + $0x2a4] sm:$0xf]  ;;  %v3396_v1 = vor.u32 %v4461_v55, %v3393_v56  ;;  %v3825_v56 = vld [vmem:[#allocation8 + $0x4f0] sm:$0xf0] }
  0xa0   :  { %v3540_v8 = vor.u32 %v4497_v62, %v3537_v63  ;;  %v4569_v53 = vld [vmem:[#allocation8 + $0x4e4] sm:$0xf]  ;;  %v3473_v63 = vld [vmem:[#allocation8 + $0x230] sm:$0xf0] }
  0xa1   :  { %v4481_v62 = vld [vmem:[#allocation8 + $0x224] sm:$0xf] }
  0xa2   :  { %v3476_v11 = vor.u32 %v4481_v62, %v3473_v63  ;;  %v4625_v63 = vld [vmem:[#allocation8 + $0x6a4] sm:$0xf] }
  0xbd   :  { %v527_v5 = vpop.f32.mrf.mxu0  ;;  %v540_v7 = vpop.f32.mrf.mxu1 }
  0xbe   :  { %v528_v6 = vadd.f32 %v527_v5, %v182_v3  ;;  %v541_v10 = vadd.f32 %v540_v7, %v183_v4  ;;  %v3665_v3 = vld [vmem:[#allocation8 + $0x3b0] sm:$0xf0]  ;;  %v4425_v4 = vld [vmem:[#allocation8 + $0x64] sm:$0xf] }
  0xbf   :  { %v3249_v5 = vld [vmem:[#allocation8 + $0x70] sm:$0xf0]  ;;  %v3668_v9 = vor.u32 %v4529_v0, %v3665_v3 }
  0xc0   :  { %v622_v13 = vmax.f32 %v528_v6, 0.0  ;;  %v623_v14 = vmax.f32 %v541_v10, 0.0  ;;  %v4457_v6 = vld [vmem:[#allocation8 + $0x164] sm:$0xf]  ;;  %v3377_v7 = vld [vmem:[#allocation8 + $0x170] sm:$0xf0]  ;;  %v3252_v10 = vor.u32 %v4425_v4, %v3249_v5 }
  0xc1   :  { %v4513_v4 = vld [vmem:[#allocation8 + $0x324] sm:$0xf]  ;;  %v3601_v5 = vld [vmem:[#allocation8 + $0x330] sm:$0xf0] }
  0xc2   :  { %v4979_v17 = vpack.c.bf16 %v622_v13, %v622_v13  ;;  %v4982_v22 = vpack.c.bf16 %v623_v14, %v623_v14  ;;  %v4525_v13 = vld [vmem:[#allocation8 + $0x384] sm:$0xf]  ;;  %v3380_v14 = vor.u32 %v4457_v6, %v3377_v7  ;;  %v189_v7 = vperm.slane %v4974_v2, 7 }
  0xc4   :  { %2192 = vmatmul.bf16.vlgmr.msra.gmra.mxu0 %v4979_v17  ;;  %2205 = vmatmul.bf16.vlgmr.msra.gmra.mxu1 %v4982_v22 }
  0xc5   :  { %v566_v27 = vpop.f32.mrf.mxu3  ;;  %2288 = vmatpush.bf16.msra.mxu0 %v3316_v16  ;;  %v529_v28 = vpop.f32.mrf.mxu0  ;;  %2301 = vmatpush.bf16.msra.mxu1 %v3444_v19  ;;  %v4421_v16 = vld [vmem:[#allocation8 + $0x44] sm:$0xf] }
  0xc6   :  { %v553_v25 = vpop.f32.mrf.mxu2  ;;  %v567_v33 = vadd.f32 %v566_v27, %v185_v18  ;;  %v542_v34 = vpop.f32.mrf.mxu1  ;;  %v3233_v18 = vld [vmem:[#allocation8 + $0x50] sm:$0xf0]  ;;  %v4453_v19 = vld [vmem:[#allocation8 + $0x144] sm:$0xf] }
  0xc7   :  { %v554_v26 = vadd.f32 %v553_v25, %v184_v15  ;;  %v3649_v15 = vld [vmem:[#allocation8 + $0x390] sm:$0xf0]  ;;  %v3236_v24 = vor.u32 %v4421_v16, %v3233_v18  ;;  %v4489_v25 = vld [vmem:[#allocation8 + $0x264] sm:$0xf]  ;;  %v3364_v28 = vor.u32 %v4453_v19, %v3361_v20  ;;  %v3604_v16 = vor.u32 %v4513_v4, %v3601_v5 }
  0xc8   :  { %v625_v50 = vmax.f32 %v567_v33, 0.0  ;;  %v3652_v23 = vor.u32 %v4525_v13, %v3649_v15  ;;  %v4521_v27 = vld [vmem:[#allocation8 + $0x364] sm:$0xf]  ;;  %v3345_v34 = vld [vmem:[#allocation8 + $0x130] sm:$0xf0] }
  0xc9   :  { %v624_v39 = vmax.f32 %v554_v26, 0.0  ;;  %2289 = vmatpush.bf16.msra.mxu0 %v3300_v29  ;;  %2302 = vmatpush.bf16.msra.mxu1 %v3428_v35  ;;  %v3505_v26 = vld [vmem:[#allocation8 + $0x270] sm:$0xf0]  ;;  %v4449_v33 = vld [vmem:[#allocation8 + $0x124] sm:$0xf]  ;;  %v187_v35 = vperm.slane %v4974_v2, 5 }
  0xca   :  { %v4988_v49 = vpack.c.bf16 %v625_v50, %v625_v50  ;;  %v3633_v29 = vld [vmem:[#allocation8 + $0x370] sm:$0xf0]  ;;  %v3508_v36 = vor.u32 %v4489_v25, %v3505_v26  ;;  %v4477_v19 = vld [vmem:[#allocation8 + $0x204] sm:$0xf] }
  0xcb   :  { %v4986_v43 = vpack.c.bf16 %v624_v39, %v624_v39  ;;  %v3636_v37 = vor.u32 %v4521_v27, %v3633_v29  ;;  %v4485_v39 = vld [vmem:[#allocation8 + $0x244] sm:$0xf]  ;;  %v3809_v13 = vld [vmem:[#allocation8 + $0x4d0] sm:$0xf0] }
  0xcc   :  { %2231 = vmatmul.bf16.vlgmr.msra.gmra.mxu3 %v4988_v49  ;;  %v3492_v55 = vor.u32 %v4485_v39, %v3489_v40  ;;  %v3937_v18 = vld [vmem:[#allocation8 + $0x5d0] sm:$0xf0]  ;;  %v4633_v26 = vld [vmem:[#allocation8 + $0x6e4] sm:$0xf]  ;;  %v3812_v29 = vor.u32 %v4565_v12, %v3809_v13 }
  0xcd   :  { %2218 = vmatmul.bf16.vlgmr.msra.gmra.mxu2 %v4986_v43  ;;  %2327 = vmatpush.bf16.msra.mxu3 %v3700_v44  ;;  %v568_v59 = vpop.f32.mrf.mxu3  ;;  %v3617_v44 = vld [vmem:[#allocation8 + $0x350] sm:$0xf0]  ;;  %v4593_v40 = vld [vmem:[#allocation8 + $0x5a4] sm:$0xf] }
  0xce   :  { %2314 = vmatpush.bf16.msra.mxu2 %v3572_v42  ;;  %v555_v57 = vpop.f32.mrf.mxu2  ;;  %2290 = vmatpush.bf16.msra.mxu0 %v3284_v45  ;;  %v3348_v42 = vor.u32 %v4449_v33, %v3345_v34  ;;  %v4413_v45 = vld [vmem:[#allocation8 + $0x4] sm:$0xf]  ;;  %v3457_v20 = vld [vmem:[#allocation8 + $0x210] sm:$0xf0] }
  0xcf   :  { %2303 = vmatpush.bf16.msra.mxu1 %v3412_v51  ;;  %v4445_v51 = vld [vmem:[#allocation8 + $0x104] sm:$0xf]  ;;  %v3585_v25 = vld [vmem:[#allocation8 + $0x310] sm:$0xf0] }
  0xd0   :  { %v4601_v57 = vld [vmem:[#allocation8 + $0x5e4] sm:$0xf]  ;;  %v3332_v3 = vor.u32 %v4445_v51, %v3329_v52  ;;  %v4177_v4 = vld [vmem:[#allocation8 + $0x7b0] sm:$0xf0] }
  0xd1   :  { %2328 = vmatpush.bf16.msra.mxu3 %v3684_v60  ;;  %v3620_v60 = vor.u32 %v4517_v41, %v3617_v44  ;;  %v3921_v41 = vld [vmem:[#allocation8 + $0x5b0] sm:$0xf0]  ;;  %v4661_v51 = vld [vmem:[#allocation8 + $0x7c4] sm:$0xf] }
  0xd2   :  { %2315 = vmatpush.bf16.msra.mxu2 %v3556_v58  ;;  %2291 = vmatpush.bf16.msra.mxu0 %v3268_v61  ;;  %v3953_v58 = vld [vmem:[#allocation8 + $0x5f0] sm:$0xf0]  ;;  %v3204_v61 = vor.u32 %v4413_v45, %v3201_v46  ;;  %v3924_v52 = vor.u32 %v4593_v40, %v3921_v41  ;;  %v4553_v5 = vld [vmem:[#allocation8 + $0x464] sm:$0xf] }
  0xd3   :  { %2304 = vmatpush.bf16.msra.mxu1 %v3396_v1  ;;  %v188_v1 = vperm.slane %v4974_v2, 6  ;;  %v4621_v13 = vld [vmem:[#allocation8 + $0x684] sm:$0xf] }
  0xd4   :  { %v4645_v40 = vld [vmem:[#allocation8 + $0x744] sm:$0xf] }
  0xd5   :  { %2329 = vmatpush.bf16.msra.mxu3 %v3668_v9 }
  0xd6   :  { %2316 = vmatpush.bf16.msra.mxu2 %v3540_v8  ;;  %2292 = vmatpush.bf16.msra.mxu0 %v3252_v10  ;;  %v3828_v8 = vor.u32 %v4569_v53, %v3825_v56  ;;  %v3956_v10 = vor.u32 %v4601_v57, %v3953_v58  ;;  %v4193_v53 = vld [vmem:[#allocation8 + $0x7d0] sm:$0xf0]  ;;  %v4589_v57 = vld [vmem:[#allocation8 + $0x584] sm:$0xf] }
  0xd7   :  { %2305 = vmatpush.bf16.msra.mxu1 %v3380_v14  ;;  %v4597_v14 = vld [vmem:[#allocation8 + $0x5c4] sm:$0xf]  ;;  %v3905_v58 = vld [vmem:[#allocation8 + $0x590] sm:$0xf0] }
  0xd8   :  { %v3940_v34 = vor.u32 %v4597_v14, %v3937_v18  ;;  %v4033_v14 = vld [vmem:[#allocation8 + $0x690] sm:$0xf0]  ;;  %v4653_v18 = vld [vmem:[#allocation8 + $0x784] sm:$0xf] }
  0xd9   :  { %2330 = vmatpush.bf16.msra.mxu3 %v3652_v23 }
  0xda   :  { %2317 = vmatpush.bf16.msra.mxu2 %v3524_v21  ;;  %2293 = vmatpush.bf16.msra.mxu0 %v3236_v24  ;;  %v4509_v24 = vld [vmem:[#allocation8 + $0x304] sm:$0xf] }
  0xdb   :  { %2306 = vmatpush.bf16.msra.mxu1 %v3364_v28  ;;  %v3588_v39 = vor.u32 %v4509_v24, %v3585_v25  ;;  %v4036_v24 = vor.u32 %v4621_v13, %v4033_v14  ;;  %v4637_v13 = vld [vmem:[#allocation8 + $0x704] sm:$0xf]  ;;  %v4097_v14 = vld [vmem:[#allocation8 + $0x710] sm:$0xf0] }
  0xdd   :  { %v579_v50 = vpop.f32.mrf.mxu0  ;;  %v592_v48 = vpop.f32.mrf.mxu1  ;;  %2331 = vmatpush.bf16.msra.mxu3 %v3636_v37  ;;  %v3793_v37 = vld [vmem:[#allocation8 + $0x4b0] sm:$0xf0] }
  0xde   :  { %v580_v47 = vadd.f32 %v579_v50, %v186_v32  ;;  %v593_v54 = vadd.f32 %v592_v48, %v187_v35  ;;  %2318 = vmatpush.bf16.msra.mxu2 %v3508_v36  ;;  %2294 = vmatpush.bf16.msra.mxu0 %v3220_v38  ;;  %v4209_v32 = vld [vmem:[#allocation8 + $0x7f0] sm:$0xf0]  ;;  %v3460_v35 = vor.u32 %v4477_v19, %v3457_v20  ;;  %v4561_v36 = vld [vmem:[#allocation8 + $0x4a4] sm:$0xf] }
  0xdf   :  { %2307 = vmatpush.bf16.msra.mxu1 %v3348_v42  ;;  %v4084_v42 = vor.u32 %v4633_v26, %v4081_v30  ;;  %v4212_v45 = vor.u32 %v4665_v31, %v4209_v32  ;;  %v3796_v46 = vor.u32 %v4561_v36, %v3793_v37  ;;  %v4065_v48 = vld [vmem:[#allocation8 + $0x6d0] sm:$0xf0]  ;;  %v4549_v20 = vld [vmem:[#allocation8 + $0x444] sm:$0xf] }
  0xe0   :  { %v626_v59 = vmax.f32 %v580_v47, 0.0  ;;  %v627_v0 = vmax.f32 %v593_v54, 0.0  ;;  %v4629_v47 = vld [vmem:[#allocation8 + $0x6c4] sm:$0xf]  ;;  %v4161_v19 = vld [vmem:[#allocation8 + $0x790] sm:$0xf0] }
  0xe1   :  { %2332 = vmatpush.bf16.msra.mxu3 %v3620_v60  ;;  %v4557_v54 = vld [vmem:[#allocation8 + $0x484] sm:$0xf]  ;;  %v4068_v60 = vor.u32 %v4629_v47, %v4065_v48  ;;  %v4164_v25 = vor.u32 %v4653_v18, %v4161_v19  ;;  %v4145_v31 = vld [vmem:[#allocation8 + $0x770] sm:$0xf0] }
  0xe2   :  { %v4995_v6 = vpack.c.bf16 %v626_v59, %v626_v59  ;;  %v4998_v9 = vpack.c.bf16 %v627_v0, %v627_v0  ;;  %2319 = vmatpush.bf16.msra.mxu2 %v3492_v55  ;;  %2295 = vmatpush.bf16.msra.mxu0 %v3204_v61  ;;  %v3777_v55 = vld [vmem:[#allocation8 + $0x490] sm:$0xf0]  ;;  %v4196_v61 = vor.u32 %v4661_v51, %v4193_v53  ;;  %v4617_v26 = vld [vmem:[#allocation8 + $0x664] sm:$0xf] }
  0xe3   :  { %2308 = vmatpush.bf16.msra.mxu1 %v3332_v3  ;;  %v3780_v62 = vor.u32 %v4557_v54, %v3777_v55  ;;  %v4049_v0 = vld [vmem:[#allocation8 + $0x6b0] sm:$0xf0]  ;;  %v4657_v3 = vld [vmem:[#allocation8 + $0x7a4] sm:$0xf]  ;;  %v4444_v54 = vld [vmem:[#allocation8 + $0xf4] sm:$0xf0] }
  0xe4   :  { %2244 = vmatmul.bf16.vlgmr.msrb.gmra.mxu0 %v4995_v6  ;;  %2257 = vmatmul.bf16.vlgmr.msrb.gmra.mxu1 %v4998_v9  ;;  %v4180_v12 = vor.u32 %v4657_v3, %v4177_v4  ;;  %v4649_v30 = vld [vmem:[#allocation8 + $0x764] sm:$0xf]  ;;  %v3713_v47 = vld [vmem:[#allocation8 + $0x410] sm:$0xf0]  ;;  %v3447_v55 = vld [vmem:[#allocation8 + $0x1e8] sm:$0xf] }
  0xe5   :  { %v605_v15 = vpop.f32.mrf.mxu2  ;;  %v618_v23 = vpop.f32.mrf.mxu3  ;;  %2333 = vmatpush.bf16.msra.mxu3 %v3604_v16  ;;  %v4545_v32 = vld [vmem:[#allocation8 + $0x424] sm:$0xf]  ;;  %v4148_v37 = vor.u32 %v4649_v30, %v4145_v31  ;;  %v3841_v51 = vld [vmem:[#allocation8 + $0x510] sm:$0xf0]  ;;  %v3303_v3 = vld [vmem:[#allocation8 + $0xc8] sm:$0xf] }
  0xe6   :  { %v606_v21 = vadd.f32 %v605_v15, %v188_v1  ;;  %v581_v2 = vpop.f32.mrf.mxu0  ;;  %v619_v27 = vadd.f32 %v618_v23, %v189_v7  ;;  %2340 = vmatpush.bf16.msrb.mxu0 %v3828_v8  ;;  %v594_v28 = vpop.f32.mrf.mxu1  ;;  %2320 = vmatpush.bf16.msra.mxu2 %v3476_v11  ;;  %v3908_v1 = vor.u32 %v4589_v57, %v3905_v58  ;;  %v3761_v7 = vld [vmem:[#allocation8 + $0x470] sm:$0xf0]  ;;  %v4585_v8 = vld [vmem:[#allocation8 + $0x564] sm:$0xf]  ;;  %v3559_v30 = vld [vmem:[#allocation8 + $0x2c8] sm:$0xf] }
  0xe7   :  { %2353 = vmatpush.bf16.msrb.mxu1 %v3956_v10  ;;  %v3889_v10 = vld [vmem:[#allocation8 + $0x570] sm:$0xf0]  ;;  %v4052_v11 = vor.u32 %v4625_v63, %v4049_v0  ;;  %v3764_v15 = vor.u32 %v4553_v5, %v3761_v7  ;;  %v4581_v23 = vld [vmem:[#allocation8 + $0x544] sm:$0xf]  ;;  %v4440_v5 = vld [vmem:[#allocation8 + $0xd4] sm:$0xf0] }
  0xe8   :  { %v628_v33 = vmax.f32 %v606_v21, 0.0  ;;  %v629_v38 = vmax.f32 %v619_v27, 0.0  ;;  %v3892_v16 = vor.u32 %v4585_v8, %v3889_v10  ;;  %v3745_v21 = vld [vmem:[#allocation8 + $0x450] sm:$0xf0]  ;;  %v4573_v48 = vld [vmem:[#allocation8 + $0x504] sm:$0xf]  ;;  %v3304_v18 = vor.u32 %v4440_v5, %v3303_v3 }
  0xe9   :  { %2334 = vmatpush.bf16.msra.mxu3 %v3588_v39  ;;  %v3873_v2 = vld [vmem:[#allocation8 + $0x550] sm:$0xf0]  ;;  %v3748_v28 = vor.u32 %v4549_v20, %v3745_v21  ;;  %v4609_v58 = vld [vmem:[#allocation8 + $0x624] sm:$0xf]  ;;  %v3431_v7 = vld [vmem:[#allocation8 + $0x1c8] sm:$0xf] }
  0xea   :  { %v5002_v50 = vpack.c.bf16 %v628_v33, %v628_v33  ;;  %v5004_v44 = vpack.c.bf16 %v629_v38, %v629_v38  ;;  %2341 = vmatpush.bf16.msrb.mxu0 %v3812_v29  ;;  %2321 = vmatpush.bf16.msra.mxu2 %v3460_v35  ;;  %v4017_v27 = vld [vmem:[#allocation8 + $0x670] sm:$0xf0]  ;;  %v3876_v29 = vor.u32 %v4581_v23, %v3873_v2  ;;  %v4613_v38 = vld [vmem:[#allocation8 + $0x644] sm:$0xf]  ;;  %v4472_v8 = vld [vmem:[#allocation8 + $0x1d4] sm:$0xf0] }
  0xeb   :  { %2354 = vmatpush.bf16.msrb.mxu1 %v3940_v34  ;;  %v3729_v33 = vld [vmem:[#allocation8 + $0x430] sm:$0xf0]  ;;  %v4577_v34 = vld [vmem:[#allocation8 + $0x524] sm:$0xf]  ;;  %v4020_v36 = vor.u32 %v4617_v26, %v4017_v27  ;;  %v3432_v19 = vor.u32 %v4472_v8, %v3431_v7  ;;  %v3703_v20 = vld [vmem:[#allocation8 + $0x3e8] sm:$0xf]  ;;  %v4100_v27 = vor.u32 %v4637_v13, %v4097_v14 }
  0xec   :  { %2270 = vmatmul.bf16.vlgmr.msrb.gmra.mxu2 %v5002_v50  ;;  %2283 = vmatmul.bf16.vlgmr.msrb.gmra.mxu3 %v5004_v44  ;;  %v3857_v35 = vld [vmem:[#allocation8 + $0x530] sm:$0xf0]  ;;  %v3732_v41 = vor.u32 %v4545_v32, %v3729_v33  ;;  %v4540_v21 = vld [vmem:[#allocation8 + $0x3f4] sm:$0xf0]  ;;  %v3287_v23 = vld [vmem:[#allocation8 + $0xa8] sm:$0xf] }
  0xed   :  { %v607_v56 = vpop.f32.mrf.mxu2  ;;  %v620_v59 = vpop.f32.mrf.mxu3  ;;  %2379 = vmatpush.bf16.msrb.mxu3 %v4212_v45  ;;  %v4001_v39 = vld [vmem:[#allocation8 + $0x650] sm:$0xf0]  ;;  %v4468_v26 = vld [vmem:[#allocation8 + $0x1b4] sm:$0xf0]  ;;  %v3367_v3 = vld [vmem:[#allocation8 + $0x148] sm:$0xf] }
  0xee   :  { %2366 = vmatpush.bf16.msrb.mxu2 %v4084_v42  ;;  %2342 = vmatpush.bf16.msrb.mxu0 %v3796_v46  ;;  %v3860_v42 = vor.u32 %v4577_v34, %v3857_v35  ;;  %v4129_v45 = vld [vmem:[#allocation8 + $0x750] sm:$0xf0]  ;;  %v4541_v46 = vld [vmem:[#allocation8 + $0x404] sm:$0xf]  ;;  %v4004_v53 = vor.u32 %v4613_v38, %v4001_v39  ;;  %v4476_v56 = vld [vmem:[#allocation8 + $0x1f4] sm:$0xf0] }
  0xef   :  { %2355 = vmatpush.bf16.msrb.mxu1 %v3924_v52  ;;  %v3319_v52 = vld [vmem:[#allocation8 + $0xe8] sm:$0xf]  ;;  %v4132_v57 = vor.u32 %v4645_v40, %v4129_v45  ;;  %v3985_v59 = vld [vmem:[#allocation8 + $0x630] sm:$0xf0]  ;;  %v4504_v31 = vld [vmem:[#allocation8 + $0x2d4] sm:$0xf0] }
  0xf0   :  { %v4113_v63 = vld [vmem:[#allocation8 + $0x730] sm:$0xf0]  ;;  %v3320_v0 = vor.u32 %v4444_v54, %v3319_v52  ;;  %v3988_v4 = vor.u32 %v4609_v58, %v3985_v59  ;;  %v3687_v34 = vld [vmem:[#allocation8 + $0x3c8] sm:$0xf]  ;;  %v4536_v35 = vld [vmem:[#allocation8 + $0x3d4] sm:$0xf0]  ;;  %v3560_v40 = vor.u32 %v4504_v31, %v3559_v30 }
  0xf1   :  { %2380 = vmatpush.bf16.msrb.mxu3 %v4196_v61  ;;  %v3844_v61 = vor.u32 %v4573_v48, %v3841_v51  ;;  %v3399_v38 = vld [vmem:[#allocation8 + $0x188] sm:$0xf]  ;;  %v4464_v39 = vld [vmem:[#allocation8 + $0x194] sm:$0xf0] }
  0xf2   :  { %2367 = vmatpush.bf16.msrb.mxu2 %v4068_v60  ;;  %2343 = vmatpush.bf16.msrb.mxu0 %v3780_v62  ;;  %v3716_v60 = vor.u32 %v4541_v46, %v3713_v47  ;;  %v4641_v62 = vld [vmem:[#allocation8 + $0x724] sm:$0xf]  ;;  %v4500_v45 = vld [vmem:[#allocation8 + $0x2b4] sm:$0xf0]  ;;  %v3400_v47 = vor.u32 %v4464_v39, %v3399_v38  ;;  %v3671_v48 = vld [vmem:[#allocation8 + $0x3a8] sm:$0xf] }
  0xf3   :  { %2356 = vmatpush.bf16.msrb.mxu1 %v3908_v1  ;;  %v3448_v1 = vor.u32 %v4476_v56, %v3447_v55  ;;  %v4116_v10 = vor.u32 %v4641_v62, %v4113_v63  ;;  %v4532_v51 = vld [vmem:[#allocation8 + $0x3b4] sm:$0xf0]  ;;  %v3255_v52 = vld [vmem:[#allocation8 + $0x68] sm:$0xf] }
  0xf4   :  { %2296 = vmatmul.bf16.vlgmr.msra.gmra.mxu0 %v4979_v17  ;;  %2309 = vmatmul.bf16.vlgmr.msra.gmra.mxu1 %v4982_v22  ;;  %v3383_v54 = vld [vmem:[#allocation8 + $0x168] sm:$0xf]  ;;  %v4460_v55 = vld [vmem:[#allocation8 + $0x174] sm:$0xf0] }
  0xf5   :  { %2381 = vmatpush.bf16.msrb.mxu3 %v4180_v12  ;;  %v3969_v12 = vld [vmem:[#allocation8 + $0x610] sm:$0xf0]  ;;  %v3527_v58 = vld [vmem:[#allocation8 + $0x288] sm:$0xf]  ;;  %v4496_v59 = vld [vmem:[#allocation8 + $0x294] sm:$0xf0] }
  0xf6   :  { %2368 = vmatpush.bf16.msrb.mxu2 %v4052_v11  ;;  %2344 = vmatpush.bf16.msrb.mxu0 %v3764_v15  ;;  %v4605_v11 = vld [vmem:[#allocation8 + $0x604] sm:$0xf]  ;;  %v3575_v15 = vld [vmem:[#allocation8 + $0x2e8] sm:$0xf]  ;;  %v4528_v63 = vld [vmem:[#allocation8 + $0x394] sm:$0xf0]  ;;  %v3528_v5 = vor.u32 %v4496_v59, %v3527_v58 }
  0xf7   :  { %2357 = vmatpush.bf16.msrb.mxu1 %v3892_v16  ;;  %v4508_v16 = vld [vmem:[#allocation8 + $0x2f4] sm:$0xf0]  ;;  %v3972_v2 = vor.u32 %v4605_v11, %v3969_v12  ;;  %v3655_v62 = vld [vmem:[#allocation8 + $0x388] sm:$0xf] }
  0xf8   :  { %v3656_v7 = vor.u32 %v4528_v63, %v3655_v62  ;;  %v3511_v8 = vld [vmem:[#allocation8 + $0x268] sm:$0xf]  ;;  %v4524_v14 = vld [vmem:[#allocation8 + $0x374] sm:$0xf0] }
  0xf9   :  { %2382 = vmatpush.bf16.msrb.mxu3 %v4164_v25  ;;  %v3415_v25 = vld [vmem:[#allocation8 + $0x1a8] sm:$0xf]  ;;  %v4448_v31 = vld [vmem:[#allocation8 + $0x114] sm:$0xf0] }
  0xfa   :  { %2369 = vmatpush.bf16.msrb.mxu2 %v4036_v24  ;;  %2345 = vmatpush.bf16.msrb.mxu0 %v3748_v28  ;;  %v4436_v24 = vld [vmem:[#allocation8 + $0xb4] sm:$0xf0]  ;;  %v3576_v28 = vor.u32 %v4508_v16, %v3575_v15  ;;  %v3416_v33 = vor.u32 %v4468_v26, %v3415_v25  ;;  %v3639_v13 = vld [vmem:[#allocation8 + $0x368] sm:$0xf] }
  0xfb   :  { %2358 = vmatpush.bf16.msrb.mxu1 %v3876_v29  ;;  %v3704_v29 = vor.u32 %v4540_v21, %v3703_v20  ;;  %v3288_v32 = vor.u32 %v4436_v24, %v3287_v23  ;;  %v3223_v15 = vld [vmem:[#allocation8 + $0x28] sm:$0xf]  ;;  %v4420_v16 = vld [vmem:[#allocation8 + $0x34] sm:$0xf0]  ;;  %v3640_v21 = vor.u32 %v4524_v14, %v3639_v13 }
  0xfc   :  { %2322 = vmatmul.bf16.vlgmr.msra.gmra.mxu2 %v4986_v43  ;;  %2335 = vmatmul.bf16.vlgmr.msra.gmra.mxu3 %v4988_v49  ;;  %v3495_v23 = vld [vmem:[#allocation8 + $0x248] sm:$0xf]  ;;  %v3224_v25 = vor.u32 %v4420_v16, %v3223_v15  ;;  %v4484_v39 = vld [vmem:[#allocation8 + $0x234] sm:$0xf0] }
  0xfd   :  { %2383 = vmatpush.bf16.msrb.mxu3 %v4148_v37  ;;  %v4432_v37 = vld [vmem:[#allocation8 + $0x94] sm:$0xf0]  ;;  %v3623_v24 = vld [vmem:[#allocation8 + $0x348] sm:$0xf] }
  0xfe   :  { %2370 = vmatpush.bf16.msrb.mxu2 %v4020_v36  ;;  %2346 = vmatpush.bf16.msrb.mxu0 %v3732_v41  ;;  %v3271_v36 = vld [vmem:[#allocation8 + $0x88] sm:$0xf]  ;;  %v3688_v41 = vor.u32 %v4536_v35, %v3687_v34  ;;  %v4572_v34 = vld [vmem:[#allocation8 + $0x4f4] sm:$0xf0] }
  0xff   :  { %2359 = vmatpush.bf16.msrb.mxu1 %v3860_v42  ;;  %v3543_v42 = vld [vmem:[#allocation8 + $0x2a8] sm:$0xf]  ;;  %v3272_v46 = vor.u32 %v4432_v37, %v3271_v36  ;;  %v4604_v36 = vld [vmem:[#allocation8 + $0x5f4] sm:$0xf0] }
 0x100   :  { %v3544_v56 = vor.u32 %v4500_v45, %v3543_v42  ;;  %v3335_v30 = vld [vmem:[#allocation8 + $0x108] sm:$0xf]  ;;  %v4516_v45 = vld [vmem:[#allocation8 + $0x334] sm:$0xf0] }
 0x101   :  { %2384 = vmatpush.bf16.msrb.mxu3 %v4132_v57  ;;  %v3672_v57 = vor.u32 %v4532_v51, %v3671_v48  ;;  %v3959_v35 = vld [vmem:[#allocation8 + $0x5e8] sm:$0xf]  ;;  %v4512_v59 = vld [vmem:[#allocation8 + $0x314] sm:$0xf0] }
 0x102   :  { %2371 = vmatpush.bf16.msrb.mxu2 %v4004_v53  ;;  %2347 = vmatpush.bf16.msrb.mxu0 %v3716_v60  ;;  %v4428_v53 = vld [vmem:[#allocation8 + $0x74] sm:$0xf0]  ;;  %v3479_v38 = vld [vmem:[#allocation8 + $0x228] sm:$0xf] }
 0x103   :  { %2360 = vmatpush.bf16.msrb.mxu1 %v3844_v61  ;;  %v3256_v60 = vor.u32 %v4428_v53, %v3255_v52  ;;  %v3384_v61 = vor.u32 %v4460_v55, %v3383_v54  ;;  %v3607_v42 = vld [vmem:[#allocation8 + $0x328] sm:$0xf]  ;;  %v3480_v51 = vor.u32 %v4484_v39, %v3479_v38  ;;  %v4568_v52 = vld [vmem:[#allocation8 + $0x4d4] sm:$0xf0] }
 0x104   :  { %v3815_v48 = vld [vmem:[#allocation8 + $0x4c8] sm:$0xf]  ;;  %v4600_v54 = vld [vmem:[#allocation8 + $0x5d4] sm:$0xf0]  ;;  %v3608_v55 = vor.u32 %v4516_v45, %v3607_v42 }
 0x105   :  { %2385 = vmatpush.bf16.msrb.mxu3 %v4116_v10  ;;  %2348 = vmatmul.bf16.vlgmr.msrb.gmra.mxu0 %v4995_v6  ;;  %v4492_v10 = vld [vmem:[#allocation8 + $0x274] sm:$0xf0]  ;;  %v3943_v53 = vld [vmem:[#allocation8 + $0x5c8] sm:$0xf]  ;;  %v3816_v62 = vor.u32 %v4568_v52, %v3815_v48 }
 0x106   :  { %2392 = vmatpush.bf16.msra.mxu0 %v3320_v0  ;;  %2372 = vmatpush.bf16.msrb.mxu2 %v3988_v4  ;;  %v3239_v0 = vld [vmem:[#allocation8 + $0x48] sm:$0xf]  ;;  %v4456_v4 = vld [vmem:[#allocation8 + $0x154] sm:$0xf0]  ;;  %v3512_v20 = vor.u32 %v4492_v10, %v3511_v8  ;;  %v3944_v63 = vor.u32 %v4600_v54, %v3943_v53 }
 0x107   :  { %2405 = vmatpush.bf16.msra.mxu1 %v3448_v1  ;;  %v4424_v1 = vld [vmem:[#allocation8 + $0x54] sm:$0xf0]  ;;  %v3368_v12 = vor.u32 %v4456_v4, %v3367_v3  ;;  %v3591_v58 = vld [vmem:[#allocation8 + $0x308] sm:$0xf] }
 0x108   :  { %2361 = vmatmul.bf16.vlgmr.msrb.gmra.mxu1 %v4998_v9  ;;  %v3240_v11 = vor.u32 %v4424_v1, %v3239_v0  ;;  %v4215_v0 = vld [vmem:[#allocation8 + $0x7e8] sm:$0xf]  ;;  %v4668_v1 = vld [vmem:[#allocation8 + $0x7f4] sm:$0xf0] }
 0x109   :  { %2386 = vmatpush.bf16.msrb.mxu3 %v4100_v27  ;;  %v4520_v27 = vld [vmem:[#allocation8 + $0x354] sm:$0xf0]  ;;  %v3799_v4 = vld [vmem:[#allocation8 + $0x4a8] sm:$0xf] }
 0x10a   :  { %2393 = vmatpush.bf16.msra.mxu0 %v3304_v18  ;;  %2373 = vmatpush.bf16.msrb.mxu2 %v3972_v2  ;;  %v3351_v18 = vld [vmem:[#allocation8 + $0x128] sm:$0xf]  ;;  %v4488_v2 = vld [vmem:[#allocation8 + $0x254] sm:$0xf0]  ;;  %v3624_v37 = vor.u32 %v4520_v27, %v3623_v24 }
 0x10b   :  { %2406 = vmatpush.bf16.msra.mxu1 %v3432_v19  ;;  %v4452_v19 = vld [vmem:[#allocation8 + $0x134] sm:$0xf0]  ;;  %v3927_v10 = vld [vmem:[#allocation8 + $0x5a8] sm:$0xf] }
 0x10c   :  { %2387 = vmatmul.bf16.vlgmr.msrb.gmra.mxu3 %v5004_v44  ;;  %v3352_v26 = vor.u32 %v4452_v19, %v3351_v18  ;;  %v4071_v13 = vld [vmem:[#allocation8 + $0x6c8] sm:$0xf]  ;;  %v4632_v14 = vld [vmem:[#allocation8 + $0x6d4] sm:$0xf0] }
 0x10d   :  { %2431 = vmatpush.bf16.msra.mxu3 %v3704_v29  ;;  %2374 = vmatmul.bf16.vlgmr.msrb.gmra.mxu2 %v5002_v50  ;;  %v4416_v29 = vld [vmem:[#allocation8 + $0x14] sm:$0xf0]  ;;  %v4199_v16 = vld [vmem:[#allocation8 + $0x7c8] sm:$0xf] }
 0x10e   :  { %2418 = vmatpush.bf16.msra.mxu2 %v3576_v28  ;;  %2394 = vmatpush.bf16.msra.mxu0 %v3288_v32  ;;  %v3207_v28 = vld [vmem:[#allocation8 + $0x8] sm:$0xf]  ;;  %v4664_v18 = vld [vmem:[#allocation8 + $0x7d4] sm:$0xf0] }
 0x10f   :  { %2407 = vmatpush.bf16.msra.mxu1 %v3416_v33  ;;  %v3831_v32 = vld [vmem:[#allocation8 + $0x4e8] sm:$0xf]  ;;  %v3496_v33 = vor.u32 %v4488_v2, %v3495_v23  ;;  %v4072_v23 = vor.u32 %v4632_v14, %v4071_v13  ;;  %v4592_v24 = vld [vmem:[#allocation8 + $0x594] sm:$0xf0] }
 0x110   :  { %v3911_v2 = vld [vmem:[#allocation8 + $0x588] sm:$0xf]  ;;  %v4628_v27 = vld [vmem:[#allocation8 + $0x6b4] sm:$0xf0] }
 0x111   :  { %2432 = vmatpush.bf16.msra.mxu3 %v3688_v41  ;;  %v3336_v41 = vor.u32 %v4448_v31, %v3335_v30  ;;  %v4660_v30 = vld [vmem:[#allocation8 + $0x7b4] sm:$0xf0]  ;;  %v3912_v31 = vor.u32 %v4592_v24, %v3911_v2  ;;  %v4039_v38 = vld [vmem:[#allocation8 + $0x688] sm:$0xf] }
 0x112   :  { %2419 = vmatpush.bf16.msra.mxu2 %v3560_v40  ;;  %2395 = vmatpush.bf16.msra.mxu0 %v3272_v46  ;;  %v3208_v40 = vor.u32 %v4416_v29, %v3207_v28  ;;  %v3832_v46 = vor.u32 %v4572_v34, %v3831_v32  ;;  %v4183_v29 = vld [vmem:[#allocation8 + $0x7a8] sm:$0xf]  ;;  %v4624_v39 = vld [vmem:[#allocation8 + $0x694] sm:$0xf0] }
 0x113   :  { %2408 = vmatpush.bf16.msra.mxu1 %v3400_v47  ;;  %v3960_v47 = vor.u32 %v4604_v36, %v3959_v35  ;;  %v3767_v32 = vld [vmem:[#allocation8 + $0x468] sm:$0xf]  ;;  %v4588_v36 = vld [vmem:[#allocation8 + $0x574] sm:$0xf0]  ;;  %v4040_v48 = vor.u32 %v4624_v39, %v4039_v38 }
 0x114   :  { %v3895_v35 = vld [vmem:[#allocation8 + $0x568] sm:$0xf]  ;;  %v4656_v42 = vld [vmem:[#allocation8 + $0x794] sm:$0xf0] }
 0x115   :  { %2433 = vmatpush.bf16.msra.mxu3 %v3672_v57  ;;  %v4480_v57 = vld [vmem:[#allocation8 + $0x214] sm:$0xf0]  ;;  %v3896_v45 = vor.u32 %v4588_v36, %v3895_v35  ;;  %v4023_v54 = vld [vmem:[#allocation8 + $0x668] sm:$0xf] }
 0x116   :  { %2420 = vmatpush.bf16.msra.mxu2 %v3544_v56  ;;  %2396 = vmatpush.bf16.msra.mxu0 %v3256_v60  ;;  %v3463_v56 = vld [vmem:[#allocation8 + $0x208] sm:$0xf]  ;;  %v4584_v52 = vld [vmem:[#allocation8 + $0x554] sm:$0xf0] }
 0x117   :  { %2409 = vmatpush.bf16.msra.mxu1 %v3384_v61  ;;  %v4087_v60 = vld [vmem:[#allocation8 + $0x6e8] sm:$0xf]  ;;  %v4636_v61 = vld [vmem:[#allocation8 + $0x6f4] sm:$0xf0]  ;;  %v3464_v3 = vor.u32 %v4480_v57, %v3463_v56 }
 0x118   :  { %v4088_v8 = vor.u32 %v4636_v61, %v4087_v60  ;;  %v4151_v57 = vld [vmem:[#allocation8 + $0x768] sm:$0xf]  ;;  %v4548_v61 = vld [vmem:[#allocation8 + $0x434] sm:$0xf0] }
 0x119   :  { %2434 = vmatpush.bf16.msra.mxu3 %v3656_v7  ;;  %v3592_v7 = vor.u32 %v4512_v59, %v3591_v58  ;;  %v4652_v58 = vld [vmem:[#allocation8 + $0x774] sm:$0xf0]  ;;  %v3735_v60 = vld [vmem:[#allocation8 + $0x428] sm:$0xf] }
 0x11a   :  { %2421 = vmatpush.bf16.msra.mxu2 %v3528_v5  ;;  %2397 = vmatpush.bf16.msra.mxu0 %v3240_v11  ;;  %v4564_v5 = vld [vmem:[#allocation8 + $0x4b4] sm:$0xf0]  ;;  %v3847_v13 = vld [vmem:[#allocation8 + $0x508] sm:$0xf] }
 0x11b   :  { %2410 = vmatpush.bf16.msra.mxu1 %v3368_v12  ;;  %v4596_v11 = vld [vmem:[#allocation8 + $0x5b4] sm:$0xf0]  ;;  %v4216_v12 = vor.u32 %v4668_v1, %v4215_v0  ;;  %v3800_v15 = vor.u32 %v4564_v5, %v3799_v4  ;;  %v4152_v1 = vor.u32 %v4652_v58, %v4151_v57  ;;  %v3736_v5 = vor.u32 %v4548_v61, %v3735_v60  ;;  %v3975_v36 = vld [vmem:[#allocation8 + $0x608] sm:$0xf]  ;;  %v4502_v58 = vld [vmem:[#allocation8 + $0x2cc] sm:$0xf] }
 0x11c   :  { %v3928_v19 = vor.u32 %v4596_v11, %v3927_v10  ;;  %v4580_v0 = vld [vmem:[#allocation8 + $0x534] sm:$0xf0]  ;;  %v3719_v10 = vld [vmem:[#allocation8 + $0x408] sm:$0xf]  ;;  %v4534_v61 = vld [vmem:[#allocation8 + $0x3cc] sm:$0xf] }
 0x11d   :  { %2435 = vmatpush.bf16.msra.mxu3 %v3640_v21  ;;  %v4560_v21 = vld [vmem:[#allocation8 + $0x494] sm:$0xf0]  ;;  %v4103_v38 = vld [vmem:[#allocation8 + $0x708] sm:$0xf] }
 0x11e   :  { %2422 = vmatpush.bf16.msra.mxu2 %v3512_v20  ;;  %2398 = vmatpush.bf16.msra.mxu0 %v3224_v25  ;;  %v3783_v20 = vld [vmem:[#allocation8 + $0x488] sm:$0xf]  ;;  %v4200_v25 = vor.u32 %v4664_v18, %v4199_v16  ;;  %v4616_v4 = vld [vmem:[#allocation8 + $0x654] sm:$0xf0]  ;;  %v4442_v16 = vld [vmem:[#allocation8 + $0xec] sm:$0xf] }
 0x11f   :  { %2411 = vmatpush.bf16.msra.mxu1 %v3352_v26  ;;  %v4055_v26 = vld [vmem:[#allocation8 + $0x6a8] sm:$0xf]  ;;  %v3784_v28 = vor.u32 %v4560_v21, %v3783_v20  ;;  %v4576_v14 = vld [vmem:[#allocation8 + $0x514] sm:$0xf0]  ;;  %v3321_v18 = vld [vmem:[#allocation8 + $0xf8] sm:$0xf0] }
 0x120   :  { %v4056_v34 = vor.u32 %v4628_v27, %v4055_v26  ;;  %v3449_v21 = vld [vmem:[#allocation8 + $0x1f8] sm:$0xf0]  ;;  %v4612_v2 = vld [vmem:[#allocation8 + $0x634] sm:$0xf0]  ;;  %v3848_v27 = vor.u32 %v4576_v14, %v3847_v13  ;;  %v4530_v14 = vld [vmem:[#allocation8 + $0x3ac] sm:$0xf] }
 0x121   :  { %2436 = vmatpush.bf16.msra.mxu3 %v3624_v37  ;;  %v4184_v37 = vor.u32 %v4660_v30, %v4183_v29  ;;  %v4644_v26 = vld [vmem:[#allocation8 + $0x734] sm:$0xf0]  ;;  %v4438_v29 = vld [vmem:[#allocation8 + $0xcc] sm:$0xf] }
 0x122   :  { %2423 = vmatpush.bf16.msra.mxu2 %v3496_v33  ;;  %2399 = vmatpush.bf16.msra.mxu0 %v3208_v40  ;;  %v4556_v33 = vld [vmem:[#allocation8 + $0x474] sm:$0xf0] }
 0x123   :  { %2412 = vmatpush.bf16.msra.mxu1 %v3336_v41  ;;  %v3768_v40 = vor.u32 %v4556_v33, %v3767_v32  ;;  %v4167_v41 = vld [vmem:[#allocation8 + $0x788] sm:$0xf]  ;;  %v3305_v32 = vld [vmem:[#allocation8 + $0xd8] sm:$0xf0]  ;;  %v4470_v33 = vld [vmem:[#allocation8 + $0x1cc] sm:$0xf] }
 0x124   :  { %v4168_v53 = vor.u32 %v4656_v42, %v4167_v41  ;;  %v4640_v39 = vld [vmem:[#allocation8 + $0x714] sm:$0xf0]  ;;  %v3577_v41 = vld [vmem:[#allocation8 + $0x2f8] sm:$0xf0]  ;;  %v3308_v42 = vor.u32 %v4438_v29, %v3305_v32 }
 0x125   :  { %2437 = vmatpush.bf16.msra.mxu3 %v3608_v55  ;;  %2400 = vmatmul.bf16.vlgmr.msra.gmra.mxu0 %v4979_v17  ;;  %v4620_v55 = vld [vmem:[#allocation8 + $0x674] sm:$0xf0] }
 0x126   :  { %2444 = vmatpush.bf16.msrb.mxu0 %v3832_v46  ;;  %2424 = vmatpush.bf16.msra.mxu2 %v3480_v51  ;;  %v3751_v46 = vld [vmem:[#allocation8 + $0x448] sm:$0xf] }
 0x127   :  { %2457 = vmatpush.bf16.msrb.mxu1 %v3960_v47  ;;  %v4552_v47 = vld [vmem:[#allocation8 + $0x454] sm:$0xf0]  ;;  %v3879_v51 = vld [vmem:[#allocation8 + $0x548] sm:$0xf] }
 0x128   :  { %2413 = vmatmul.bf16.vlgmr.msra.gmra.mxu1 %v4982_v22  ;;  %v3752_v56 = vor.u32 %v4552_v47, %v3751_v46  ;;  %v3880_v59 = vor.u32 %v4584_v52, %v3879_v51  ;;  %v3705_v46 = vld [vmem:[#allocation8 + $0x3f8] sm:$0xf0]  ;;  %v4434_v51 = vld [vmem:[#allocation8 + $0xac] sm:$0xf] }
 0x129   :  { %2438 = vmatpush.bf16.msra.mxu3 %v3592_v7  ;;  %v4135_v7 = vld [vmem:[#allocation8 + $0x748] sm:$0xf]  ;;  %v3289_v52 = vld [vmem:[#allocation8 + $0xb8] sm:$0xf0] }
 0x12a   :  { %2445 = vmatpush.bf16.msrb.mxu0 %v3816_v62  ;;  %2425 = vmatpush.bf16.msra.mxu2 %v3464_v3  ;;  %v4024_v62 = vor.u32 %v4620_v55, %v4023_v54  ;;  %v4007_v3 = vld [vmem:[#allocation8 + $0x648] sm:$0xf]  ;;  %v4466_v55 = vld [vmem:[#allocation8 + $0x1ac] sm:$0xf]  ;;  %v3292_v60 = vor.u32 %v4434_v51, %v3289_v52  ;;  %v3353_v52 = vld [vmem:[#allocation8 + $0x138] sm:$0xf0] }
 0x12b   :  { %2458 = vmatpush.bf16.msrb.mxu1 %v3944_v63  ;;  %v3863_v63 = vld [vmem:[#allocation8 + $0x528] sm:$0xf]  ;;  %v4450_v51 = vld [vmem:[#allocation8 + $0x12c] sm:$0xf] }
 0x12c   :  { %2439 = vmatmul.bf16.vlgmr.msra.gmra.mxu3 %v4988_v49  ;;  %v3864_v11 = vor.u32 %v4580_v0, %v3863_v63  ;;  %v4430_v0 = vld [vmem:[#allocation8 + $0x8c] sm:$0xf] }
 0x12d   :  { %2483 = vmatpush.bf16.msrb.mxu3 %v4216_v12  ;;  %2426 = vmatmul.bf16.vlgmr.msra.gmra.mxu2 %v4986_v43  ;;  %v4544_v12 = vld [vmem:[#allocation8 + $0x414] sm:$0xf0] }
 0x12e   :  { %2470 = vmatpush.bf16.msrb.mxu2 %v4088_v8  ;;  %2446 = vmatpush.bf16.msrb.mxu0 %v3800_v15  ;;  %v4648_v8 = vld [vmem:[#allocation8 + $0x754] sm:$0xf0]  ;;  %v4008_v15 = vor.u32 %v4616_v4, %v4007_v3  ;;  %v3720_v24 = vor.u32 %v4544_v12, %v3719_v10  ;;  %v3545_v12 = vld [vmem:[#allocation8 + $0x2b8] sm:$0xf0] }
 0x12f   :  { %2459 = vmatpush.bf16.msrb.mxu1 %v3928_v19  ;;  %v4474_v19 = vld [vmem:[#allocation8 + $0x1ec] sm:$0xf]  ;;  %v4136_v20 = vor.u32 %v4648_v8, %v4135_v7  ;;  %v3401_v7 = vld [vmem:[#allocation8 + $0x198] sm:$0xf0] }
 0x130   :  { %v3452_v30 = vor.u32 %v4474_v19, %v3449_v21  ;;  %v3257_v19 = vld [vmem:[#allocation8 + $0x78] sm:$0xf0]  ;;  %v4458_v21 = vld [vmem:[#allocation8 + $0x16c] sm:$0xf] }
 0x131   :  { %2484 = vmatpush.bf16.msrb.mxu3 %v4200_v25  ;;  %v4119_v25 = vld [vmem:[#allocation8 + $0x728] sm:$0xf] }
 0x132   :  { %2471 = vmatpush.bf16.msrb.mxu2 %v4072_v23  ;;  %2447 = vmatpush.bf16.msrb.mxu0 %v3784_v28  ;;  %v3991_v23 = vld [vmem:[#allocation8 + $0x628] sm:$0xf]  ;;  %v3324_v28 = vor.u32 %v4442_v16, %v3321_v18  ;;  %v4120_v35 = vor.u32 %v4644_v26, %v4119_v25  ;;  %v4426_v18 = vld [vmem:[#allocation8 + $0x6c] sm:$0xf]  ;;  %v3529_v25 = vld [vmem:[#allocation8 + $0x298] sm:$0xf0] }
 0x133   :  { %2460 = vmatpush.bf16.msrb.mxu1 %v3912_v31  ;;  %v3992_v31 = vor.u32 %v4612_v2, %v3991_v23  ;;  %v3385_v23 = vld [vmem:[#allocation8 + $0x178] sm:$0xf0]  ;;  %v3260_v26 = vor.u32 %v4426_v18, %v3257_v19 }
 0x134   :  { %v3388_v29 = vor.u32 %v4458_v21, %v3385_v23  ;;  %v3609_v18 = vld [vmem:[#allocation8 + $0x338] sm:$0xf0]  ;;  %v4566_v21 = vld [vmem:[#allocation8 + $0x4cc] sm:$0xf] }
 0x135   :  { %2485 = vmatpush.bf16.msrb.mxu3 %v4184_v37  ;;  %v4608_v37 = vld [vmem:[#allocation8 + $0x614] sm:$0xf0] }
 0x136   :  { %2472 = vmatpush.bf16.msrb.mxu2 %v4056_v34  ;;  %2448 = vmatpush.bf16.msrb.mxu0 %v3768_v40  ;;  %v3433_v34 = vld [vmem:[#allocation8 + $0x1d8] sm:$0xf0]  ;;  %v4506_v40 = vld [vmem:[#allocation8 + $0x2ec] sm:$0xf] }
 0x137   :  { %2461 = vmatpush.bf16.msrb.mxu1 %v3896_v45  ;;  %v4538_v45 = vld [vmem:[#allocation8 + $0x3ec] sm:$0xf]  ;;  %v3436_v47 = vor.u32 %v4470_v33, %v3433_v34  ;;  %v3580_v54 = vor.u32 %v4506_v40, %v3577_v41 }
 0x138   :  { %v3708_v57 = vor.u32 %v4538_v45, %v3705_v46  ;;  %v4454_v34 = vld [vmem:[#allocation8 + $0x14c] sm:$0xf] }
 0x139   :  { %2486 = vmatpush.bf16.msrb.mxu3 %v4168_v53  ;;  %v4104_v53 = vor.u32 %v4640_v39, %v4103_v38  ;;  %v4490_v38 = vld [vmem:[#allocation8 + $0x26c] sm:$0xf]  ;;  %v3513_v39 = vld [vmem:[#allocation8 + $0x278] sm:$0xf0] }
 0x13a   :  { %2473 = vmatpush.bf16.msrb.mxu2 %v4040_v48  ;;  %2449 = vmatpush.bf16.msrb.mxu0 %v3752_v56  ;;  %v3976_v48 = vor.u32 %v4608_v37, %v3975_v36  ;;  %v3417_v56 = vld [vmem:[#allocation8 + $0x1b8] sm:$0xf0]  ;;  %v4522_v41 = vld [vmem:[#allocation8 + $0x36c] sm:$0xf] }
 0x13b   :  { %2462 = vmatpush.bf16.msrb.mxu1 %v3880_v59  ;;  %v3561_v59 = vld [vmem:[#allocation8 + $0x2d8] sm:$0xf0]  ;;  %v3420_v63 = vor.u32 %v4466_v55, %v3417_v56  ;;  %v4418_v46 = vld [vmem:[#allocation8 + $0x2c] sm:$0xf] }
 0x13c   :  { %v3564_v4 = vor.u32 %v4502_v58, %v3561_v59  ;;  %v4486_v55 = vld [vmem:[#allocation8 + $0x24c] sm:$0xf]  ;;  %v3497_v56 = vld [vmem:[#allocation8 + $0x258] sm:$0xf0] }
 0x13d   :  { %2487 = vmatpush.bf16.msrb.mxu3 %v4152_v1  ;;  %v3273_v1 = vld [vmem:[#allocation8 + $0x98] sm:$0xf0]  ;;  %v4518_v59 = vld [vmem:[#allocation8 + $0x34c] sm:$0xf] }
 0x13e   :  { %2474 = vmatpush.bf16.msrb.mxu2 %v4024_v62  ;;  %2450 = vmatpush.bf16.msrb.mxu0 %v3736_v5  ;;  %v3689_v62 = vld [vmem:[#allocation8 + $0x3d8] sm:$0xf0]  ;;  %v4462_v5 = vld [vmem:[#allocation8 + $0x18c] sm:$0xf]  ;;  %v3276_v13 = vor.u32 %v4430_v0, %v3273_v1 }
 0x13f   :  { %2463 = vmatpush.bf16.msrb.mxu1 %v3864_v11  ;;  %v3692_v8 = vor.u32 %v4534_v61, %v3689_v62  ;;  %v4498_v11 = vld [vmem:[#allocation8 + $0x2ac] sm:$0xf]  ;;  %v3404_v16 = vor.u32 %v4462_v5, %v3401_v7  ;;  %v3356_v62 = vor.u32 %v4450_v51, %v3353_v52  ;;  %v3337_v1 = vld [vmem:[#allocation8 + $0x118] sm:$0xf0] }
 0x140   :  { %v4414_v61 = vld [vmem:[#allocation8 + $0xc] sm:$0xf]  ;;  %v3833_v7 = vld [vmem:[#allocation8 + $0x4f8] sm:$0xf0] }
 0x141   :  { %2488 = vmatpush.bf16.msrb.mxu3 %v4136_v20  ;;  %v5022_v3 = vpop.f32.mrf.mxu0  ;;  %v5024_v10 = vpop.f32.mrf.mxu1  ;;  %v3548_v20 = vor.u32 %v4498_v11, %v3545_v12  ;;  %v4446_v0 = vld [vmem:[#allocation8 + $0x10c] sm:$0xf]  ;;  %v3961_v12 = vld [vmem:[#allocation8 + $0x5f8] sm:$0xf0] }
 0x142   :  { %2475 = vmatpush.bf16.msrb.mxu2 %v4008_v15  ;;  %2451 = vmatpush.bf16.msrb.mxu0 %v3720_v24  ;;  %v3673_v15 = vld [vmem:[#allocation8 + $0x3b8] sm:$0xf0]  ;;  %v4494_v24 = vld [vmem:[#allocation8 + $0x28c] sm:$0xf]  ;;  %v3340_v19 = vor.u32 %v4446_v0, %v3337_v1 }
 0x143   :  { %2464 = vmatpush.bf16.msrb.mxu1 %v3848_v27  ;;  %v3676_v2 = vor.u32 %v4530_v14, %v3673_v15  ;;  %v4526_v27 = vld [vmem:[#allocation8 + $0x38c] sm:$0xf]  ;;  %v3532_v33 = vor.u32 %v4494_v24, %v3529_v25  ;;  %v3481_v14 = vld [vmem:[#allocation8 + $0x238] sm:$0xf0] }
 0x144   :  { %v4570_v5 = vld [vmem:[#allocation8 + $0x4ec] sm:$0xf]  ;;  %v3817_v24 = vld [vmem:[#allocation8 + $0x4d8] sm:$0xf0] }
 0x145   :  { %2489 = vmatpush.bf16.msrb.mxu3 %v4120_v35  ;;  %2452 = vmatmul.bf16.vlgmr.msrb.gmra.mxu0 %v4995_v6  ;;  %v3369_v35 = vld [vmem:[#allocation8 + $0x158] sm:$0xf0]  ;;  %v4598_v25 = vld [vmem:[#allocation8 + $0x5cc] sm:$0xf] }
 0x146   :  { %2496 = vmatpush.bf16.msra.mxu0 %v3324_v28  ;;  %2476 = vmatpush.bf16.msrb.mxu2 %v3992_v31  ;;  %v3657_v28 = vld [vmem:[#allocation8 + $0x398] sm:$0xf0]  ;;  %v3372_v45 = vor.u32 %v4454_v34, %v3369_v35  ;;  %v4634_v34 = vld [vmem:[#allocation8 + $0x6ec] sm:$0xf] }
 0x147   :  { %2509 = vmatpush.bf16.msra.mxu1 %v3452_v30  ;;  %v4422_v30 = vld [vmem:[#allocation8 + $0x4c] sm:$0xf]  ;;  %v3241_v31 = vld [vmem:[#allocation8 + $0x58] sm:$0xf0]  ;;  %v3660_v36 = vor.u32 %v4526_v27, %v3657_v28 }
 0x148   :  { %2465 = vmatmul.bf16.vlgmr.msrb.gmra.mxu1 %v4998_v9  ;;  %v3244_v40 = vor.u32 %v4422_v30, %v3241_v31  ;;  %v3465_v30 = vld [vmem:[#allocation8 + $0x218] sm:$0xf0]  ;;  %v4510_v31 = vld [vmem:[#allocation8 + $0x30c] sm:$0xf] }
 0x149   :  { %2490 = vmatpush.bf16.msrb.mxu3 %v4104_v53  ;;  %v2195_v32 = vpop.f32.mrf.mxu0  ;;  %v2208_v37 = vpop.f32.mrf.mxu1  ;;  %v4089_v35 = vld [vmem:[#allocation8 + $0x6f8] sm:$0xf0]  ;;  %v4630_v52 = vld [vmem:[#allocation8 + $0x6cc] sm:$0xf] }
 0x14a   :  { %2497 = vmatpush.bf16.msra.mxu0 %v3308_v42  ;;  %2477 = vmatpush.bf16.msrb.mxu2 %v3976_v48  ;;  %v3641_v42 = vld [vmem:[#allocation8 + $0x378] sm:$0xf0]  ;;  %v3516_v48 = vor.u32 %v4490_v38, %v3513_v39  ;;  %v4666_v37 = vld [vmem:[#allocation8 + $0x7ec] sm:$0xf] }
 0x14b   :  { %2510 = vmatpush.bf16.msra.mxu1 %v3436_v47  ;;  %v3225_v47 = vld [vmem:[#allocation8 + $0x38] sm:$0xf0]  ;;  %v4626_v1 = vld [vmem:[#allocation8 + $0x6ac] sm:$0xf] }
 0x14c   :  { %2491 = vmatmul.bf16.vlgmr.msrb.gmra.mxu3 %v5004_v44  ;;  %v3228_v58 = vor.u32 %v4418_v46, %v3225_v47  ;;  %v4217_v38 = vld [vmem:[#allocation8 + $0x7f8] sm:$0xf0]  ;;  %v4092_v46 = vor.u32 %v4634_v34, %v4089_v35  ;;  %v4594_v47 = vld [vmem:[#allocation8 + $0x5ac] sm:$0xf] }
 0x14d   :  { %2535 = vmatpush.bf16.msra.mxu3 %v3708_v57  ;;  %2478 = vmatmul.bf16.vlgmr.msrb.gmra.mxu2 %v5002_v50  ;;  %v4220_v51 = vor.u32 %v4666_v37, %v4217_v38  ;;  %v4650_v35 = vld [vmem:[#allocation8 + $0x76c] sm:$0xf] }
 0x14e   :  { %2522 = vmatpush.bf16.msra.mxu2 %v3580_v54  ;;  %2498 = vmatpush.bf16.msra.mxu0 %v3292_v60  ;;  %v3644_v54 = vor.u32 %v4522_v41, %v3641_v42  ;;  %v3625_v60 = vld [vmem:[#allocation8 + $0x358] sm:$0xf0]  ;;  %v4562_v41 = vld [vmem:[#allocation8 + $0x4ac] sm:$0xf] }
 0x14f   :  { %2511 = vmatpush.bf16.msra.mxu1 %v3420_v63  ;;  %v5030_v57 = vpop.f32.mrf.mxu3  ;;  %v3209_v63 = vld [vmem:[#allocation8 + $0x18] sm:$0xf0]  ;;  %v3628_v11 = vor.u32 %v4518_v59, %v3625_v60  ;;  %v4558_v60 = vld [vmem:[#allocation8 + $0x48c] sm:$0xf] }
 0x150   :  { %v5028_v53 = vpop.f32.mrf.mxu2  ;;  %v3212_v15 = vor.u32 %v4414_v61, %v3209_v63  ;;  %v3801_v42 = vld [vmem:[#allocation8 + $0x4b8] sm:$0xf0]  ;;  %v4546_v38 = vld [vmem:[#allocation8 + $0x42c] sm:$0xf] }
 0x151   :  { %2536 = vmatpush.bf16.msra.mxu3 %v3692_v8  ;;  %v4602_v8 = vld [vmem:[#allocation8 + $0x5ec] sm:$0xf]  ;;  %v3785_v61 = vld [vmem:[#allocation8 + $0x498] sm:$0xf0] }
 0x152   :  { %2523 = vmatpush.bf16.msra.mxu2 %v3564_v4  ;;  %2499 = vmatpush.bf16.msra.mxu0 %v3276_v13  ;;  %v3500_v4 = vor.u32 %v4486_v55, %v3497_v56  ;;  %v4482_v13 = vld [vmem:[#allocation8 + $0x22c] sm:$0xf]  ;;  %v3964_v23 = vor.u32 %v4602_v8, %v3961_v12  ;;  %v3804_v55 = vor.u32 %v4562_v41, %v3801_v42  ;;  %v3913_v63 = vld [vmem:[#allocation8 + $0x598] sm:$0xf0] }
 0x153   :  { %2512 = vmatpush.bf16.msra.mxu1 %v3404_v16  ;;  %v4514_v16 = vld [vmem:[#allocation8 + $0x32c] sm:$0xf]  ;;  %v3865_v42 = vld [vmem:[#allocation8 + $0x538] sm:$0xf0] }
 0x154   :  { %v3612_v28 = vor.u32 %v4514_v16, %v3609_v18  ;;  %v4662_v56 = vld [vmem:[#allocation8 + $0x7cc] sm:$0xf]  ;;  %v3897_v18 = vld [vmem:[#allocation8 + $0x578] sm:$0xf0] }
 0x155   :  { %2537 = vmatpush.bf16.msra.mxu3 %v3676_v2  ;;  %v3484_v2 = vor.u32 %v4482_v13, %v3481_v14  ;;  %v4658_v8 = vld [vmem:[#allocation8 + $0x7ac] sm:$0xf]  ;;  %v3769_v14 = vld [vmem:[#allocation8 + $0x478] sm:$0xf0] }
 0x156   :  { %2524 = vmatpush.bf16.msra.mxu2 %v3548_v20  ;;  %2500 = vmatpush.bf16.msra.mxu0 %v3260_v26  ;;  %v3836_v20 = vor.u32 %v4570_v5, %v3833_v7  ;;  %v3945_v26 = vld [vmem:[#allocation8 + $0x5d8] sm:$0xf0]  ;;  %v3788_v7 = vor.u32 %v4558_v60, %v3785_v61  ;;  %v4554_v13 = vld [vmem:[#allocation8 + $0x46c] sm:$0xf] }
 0x157   :  { %2513 = vmatpush.bf16.msra.mxu1 %v3388_v29  ;;  %v4478_v29 = vld [vmem:[#allocation8 + $0x20c] sm:$0xf]  ;;  %v2234_v32 = vpop.f32.mrf.mxu3  ;;  %v3948_v39 = vor.u32 %v4598_v25, %v3945_v26  ;;  %v3721_v60 = vld [vmem:[#allocation8 + $0x418] sm:$0xf0] }
 0x158   :  { %v2221_v27 = vpop.f32.mrf.mxu2  ;;  %v4586_v16 = vld [vmem:[#allocation8 + $0x56c] sm:$0xf]  ;;  %v4025_v32 = vld [vmem:[#allocation8 + $0x678] sm:$0xf0] }
 0x159   :  { %2538 = vmatpush.bf16.msra.mxu3 %v3660_v36  ;;  %v3820_v36 = vor.u32 %v4566_v21, %v3817_v24  ;;  %v3772_v21 = vor.u32 %v4554_v13, %v3769_v14  ;;  %v3900_v24 = vor.u32 %v4586_v16, %v3897_v18  ;;  %v4550_v25 = vld [vmem:[#allocation8 + $0x44c] sm:$0xf]  ;;  %v4121_v13 = vld [vmem:[#allocation8 + $0x738] sm:$0xf0] }
 0x15a   :  { %2525 = vmatpush.bf16.msra.mxu2 %v3532_v33  ;;  %2501 = vmatpush.bf16.msra.mxu0 %v3244_v40  ;;  %v3593_v33 = vld [vmem:[#allocation8 + $0x318] sm:$0xf0]  ;;  %v3468_v40 = vor.u32 %v4478_v29, %v3465_v30  ;;  %v4582_v27 = vld [vmem:[#allocation8 + $0x54c] sm:$0xf] }
 0x15b   :  { %2514 = vmatpush.bf16.msra.mxu1 %v3372_v45  ;;  %v3596_v45 = vor.u32 %v4510_v31, %v3593_v33  ;;  %v4618_v31 = vld [vmem:[#allocation8 + $0x66c] sm:$0xf] }
 0x15c   :  { %v4578_v41 = vld [vmem:[#allocation8 + $0x52c] sm:$0xf] }
 0x15d   :  { %2539 = vmatpush.bf16.msra.mxu3 %v3644_v54  ;;  %v4073_v54 = vld [vmem:[#allocation8 + $0x6d8] sm:$0xf0] }
 0x15e   :  { %2526 = vmatpush.bf16.msra.mxu2 %v3516_v48  ;;  %2502 = vmatpush.bf16.msra.mxu0 %v3228_v58  ;;  %v3929_v48 = vld [vmem:[#allocation8 + $0x5b8] sm:$0xf0] }
 0x15f   :  { %2515 = vmatpush.bf16.msra.mxu1 %v3356_v62  ;;  %v4201_v58 = vld [vmem:[#allocation8 + $0x7d8] sm:$0xf0]  ;;  %v3932_v59 = vor.u32 %v4594_v47, %v3929_v48  ;;  %v4590_v62 = vld [vmem:[#allocation8 + $0x58c] sm:$0xf] }
 0x160   :  { %v3916_v12 = vor.u32 %v4590_v62, %v3913_v63  ;;  %v4614_v47 = vld [vmem:[#allocation8 + $0x64c] sm:$0xf]  ;;  %v4009_v48 = vld [vmem:[#allocation8 + $0x658] sm:$0xf0] }
 0x161   :  { %2540 = vmatpush.bf16.msra.mxu3 %v3628_v11  ;;  %v5034_v0 = vpop.f32.mrf.mxu0  ;;  %v5037_v5 = vpop.f32.mrf.mxu1  ;;  %v4185_v11 = vld [vmem:[#allocation8 + $0x7b8] sm:$0xf0]  ;;  %v4574_v62 = vld [vmem:[#allocation8 + $0x50c] sm:$0xf] }
 0x162   :  { %2527 = vmatpush.bf16.msra.mxu2 %v3500_v4  ;;  %2503 = vmatpush.bf16.msra.mxu0 %v3212_v15  ;;  %v4057_v4 = vld [vmem:[#allocation8 + $0x6b8] sm:$0xf0] }
 0x163   :  { %2516 = vmatpush.bf16.msra.mxu1 %v3340_v19  ;;  %v4060_v15 = vor.u32 %v4626_v1, %v4057_v4  ;;  %v4188_v19 = vor.u32 %v4658_v8, %v4185_v11  ;;  %v3849_v63 = vld [vmem:[#allocation8 + $0x518] sm:$0xf0]  ;;  %v4610_v4 = vld [vmem:[#allocation8 + $0x62c] sm:$0xf] }
 0x164   :  { %v3852_v14 = vor.u32 %v4574_v62, %v3849_v63 }
 0x165   :  { %2541 = vmatpush.bf16.msra.mxu3 %v3612_v28  ;;  %2504 = vmatmul.bf16.vlgmr.msra.gmra.mxu0 %v4979_v17  ;;  %v4076_v17 = vor.u32 %v4630_v52, %v4073_v54  ;;  %v3881_v28 = vld [vmem:[#allocation8 + $0x558] sm:$0xf0]  ;;  %v4646_v54 = vld [vmem:[#allocation8 + $0x74c] sm:$0xf] }
 0x166   :  { %2548 = vmatpush.bf16.msrb.mxu0 %v3836_v20  ;;  %2528 = vmatpush.bf16.msra.mxu2 %v3484_v2  ;;  %v4622_v20 = vld [vmem:[#allocation8 + $0x68c] sm:$0xf]  ;;  %v4169_v2 = vld [vmem:[#allocation8 + $0x798] sm:$0xf0]  ;;  %v3884_v37 = vor.u32 %v4582_v27, %v3881_v28  ;;  %v4683_v28 = vld [vmem:[#allocation11 + $0x70] sm:$0xff] }
 0x167   :  { %2561 = vmatpush.bf16.msrb.mxu1 %v3964_v23  ;;  %v4654_v23 = vld [vmem:[#allocation8 + $0x78c] sm:$0xf] }
 0x168   :  { %2517 = vmatmul.bf16.vlgmr.msra.gmra.mxu1 %v4982_v22  ;;  %v4204_v22 = vor.u32 %v4662_v56, %v4201_v58  ;;  %v4172_v30 = vor.u32 %v4654_v23, %v4169_v2  ;;  %v3868_v58 = vor.u32 %v4578_v41, %v3865_v42  ;;  %v4638_v2 = vld [vmem:[#allocation8 + $0x70c] sm:$0xf]  ;;  %v4672_v42 = vld [vmem:[#allocation11 + $0x18] sm:$0xff] }
 0x169   :  { %2542 = vmatpush.bf16.msra.mxu3 %v3596_v45  ;;  %v2247_v29 = vpop.f32.mrf.mxu0  ;;  %v2260_v33 = vpop.f32.mrf.mxu1  ;;  %v5040_v45 = vld [vmem:[#allocation10] sm:$0xf] }
 0x16a   :  { %2549 = vmatpush.bf16.msrb.mxu0 %v3820_v36  ;;  %2529 = vmatpush.bf16.msra.mxu2 %v3468_v40  ;;  %v4153_v36 = vld [vmem:[#allocation8 + $0x778] sm:$0xf0]  ;;  %v4028_v40 = vor.u32 %v4618_v31, %v4025_v32  ;;  %v896_v61 = vperm.slane %v5040_v45, 0  ;;  %v897_v27 = vperm.slane %v5040_v45, 1  ;;  %v4674_v32 = vld [vmem:[#allocation11 + $0x28] sm:$0xff] }
 0x16b   :  { %2562 = vmatpush.bf16.msrb.mxu1 %v3948_v39  ;;  %v3737_v39 = vld [vmem:[#allocation8 + $0x438] sm:$0xf0] }
 0x16c   :  { %2543 = vmatmul.bf16.vlgmr.msra.gmra.mxu3 %v4988_v49  ;;  %v3753_v49 = vld [vmem:[#allocation8 + $0x458] sm:$0xf0]  ;;  %v3740_v52 = vor.u32 %v4546_v38, %v3737_v39  ;;  %v2194_v16 = vadd.f32 %v5022_v3, %v896_v61  ;;  %v4678_v61 = vld [vmem:[#allocation11 + $0x48] sm:$0xff] }
 0x16d   :  { %2587 = vmatpush.bf16.msrb.mxu3 %v4220_v51  ;;  %2530 = vmatmul.bf16.vlgmr.msra.gmra.mxu2 %v4986_v43  ;;  %v4041_v43 = vld [vmem:[#allocation8 + $0x698] sm:$0xf0]  ;;  %v3756_v34 = vor.u32 %v4550_v25, %v3753_v49  ;;  %v4675_v49 = vld [vmem:[#allocation11 + $0x30] sm:$0xff] }
 0x16e   :  { %2574 = vmatpush.bf16.msrb.mxu2 %v4092_v46  ;;  %2550 = vmatpush.bf16.msrb.mxu0 %v3804_v55  ;;  %v4044_v26 = vor.u32 %v4622_v20, %v4041_v43  ;;  %v4156_v46 = vor.u32 %v4650_v35, %v4153_v36  ;;  %v4137_v55 = vld [vmem:[#allocation8 + $0x758] sm:$0xf0]  ;;  %v4606_v43 = vld [vmem:[#allocation8 + $0x60c] sm:$0xf] }
 0x16f   :  { %2563 = vmatpush.bf16.msrb.mxu1 %v3932_v59  ;;  %v5042_v51 = vpop.f32.mrf.mxu2  ;;  %v5044_v56 = vpop.f32.mrf.mxu3  ;;  %v4542_v59 = vld [vmem:[#allocation8 + $0x40c] sm:$0xf]  ;;  %v4140_v1 = vor.u32 %v4646_v54, %v4137_v55  ;;  %v4679_v54 = vld [vmem:[#allocation11 + $0x50] sm:$0xff] }
 0x170   :  { %v3724_v11 = vor.u32 %v4542_v59, %v3721_v60  ;;  %v4670_v59 = vld [vmem:[#allocation11 + $0x8] sm:$0xff] }
 0x171   :  { %2588 = vmatpush.bf16.msrb.mxu3 %v4204_v22  ;;  %v2297_v22 = vpop.f32.mrf.mxu0  ;;  %v2310_v8 = vpop.f32.mrf.mxu1 }
 0x172   :  { %2575 = vmatpush.bf16.msrb.mxu2 %v4076_v17  ;;  %2551 = vmatpush.bf16.msrb.mxu0 %v3788_v7  ;;  %v4012_v17 = vor.u32 %v4614_v47, %v4009_v48  ;;  %v3993_v7 = vld [vmem:[#allocation8 + $0x638] sm:$0xf0] }
 0x173   :  { %2564 = vmatpush.bf16.msrb.mxu1 %v3916_v12  ;;  %v4642_v12 = vld [vmem:[#allocation8 + $0x72c] sm:$0xf]  ;;  %v3996_v18 = vor.u32 %v4610_v4, %v3993_v7 }
 0x174   :  { %v4124_v20 = vor.u32 %v4642_v12, %v4121_v13  ;;  %v4691_v12 = vld [vmem:[#allocation11 + $0xb0] sm:$0xff]  ;;  %v4690_v13 = vld [vmem:[#allocation11 + $0xa8] sm:$0xff] }
 0x175   :  { %2589 = vmatpush.bf16.msrb.mxu3 %v4188_v19  ;;  %v4684_v19 = vld [vmem:[#allocation11 + $0x78] sm:$0xff] }
 0x176   :  { %2576 = vmatpush.bf16.msrb.mxu2 %v4060_v15  ;;  %2552 = vmatpush.bf16.msrb.mxu0 %v3772_v21  ;;  %v4676_v15 = vld [vmem:[#allocation11 + $0x38] sm:$0xff] }
 0x177   :  { %2565 = vmatpush.bf16.msrb.mxu1 %v3900_v24  ;;  %v3977_v21 = vld [vmem:[#allocation8 + $0x618] sm:$0xf0]  ;;  %v2273_v23 = vpop.f32.mrf.mxu2  ;;  %v2286_v25 = vpop.f32.mrf.mxu3 }
 0x178   :  { %v4105_v24 = vld [vmem:[#allocation8 + $0x718] sm:$0xf0]  ;;  %v3980_v3 = vor.u32 %v4606_v43, %v3977_v21  ;;  %v4687_v43 = vld [vmem:[#allocation11 + $0x90] sm:$0xff] }
 0x179   :  { %2590 = vmatpush.bf16.msrb.mxu3 %v4172_v30  ;;  %v2299_v29 = vpop.f32.mrf.mxu0  ;;  %v4108_v30 = vor.u32 %v4638_v2, %v4105_v24  ;;  %v2312_v31 = vpop.f32.mrf.mxu1  ;;  %v4686_v2 = vld [vmem:[#allocation11 + $0x88] sm:$0xff] }
 0x17a   :  { %2577 = vmatpush.bf16.msrb.mxu2 %v4044_v26  ;;  %2553 = vmatpush.bf16.msrb.mxu0 %v3756_v34  ;;  %v2207_v26 = vadd.f32 %v5024_v10, %v2194_v16  ;;  %v2298_v34 = vadd.f32 %v2297_v22, %v897_v27  ;;  %v4682_v10 = vld [vmem:[#allocation11 + $0x68] sm:$0xff]  ;;  %v4669_v22 = vld [vmem:[#allocation11] sm:$0xff] }
 0x17b   :  { %2566 = vmatpush.bf16.msrb.mxu1 %v3884_v37  ;;  %v4689_v16 = vld [vmem:[#allocation11 + $0xa0] sm:$0xff] }
 0x17c   :  { %v2220_v33 = vadd.f32 %v5028_v53, %v2207_v26  ;;  %v2311_v38 = vadd.f32 %v2310_v8, %v2298_v34  ;;  %v898_v26 = vperm.slane %v5040_v45, 2 }
 0x17d   :  { %2591 = vmatpush.bf16.msrb.mxu3 %v4156_v46  ;;  %v4680_v46 = vld [vmem:[#allocation11 + $0x58] sm:$0xff] }
 0x17e   :  { %2578 = vmatpush.bf16.msrb.mxu2 %v4028_v40  ;;  %2554 = vmatpush.bf16.msrb.mxu0 %v3740_v52  ;;  %v2233_v37 = vadd.f32 %v5030_v57, %v2220_v33  ;;  %v4671_v57 = vld [vmem:[#allocation11 + $0x10] sm:$0xff] }
 0x17f   :  { %2567 = vmatpush.bf16.msrb.mxu1 %v3868_v58  ;;  %v2323_v35 = vpop.f32.mrf.mxu2  ;;  %v2336_v36 = vpop.f32.mrf.mxu3 }
 0x180   :  { %v2246_v53 = vadd.f32 %v5034_v0, %v2233_v37  ;;  %v2324_v39 = vadd.f32 %v2323_v35, %v2311_v38  ;;  %v4700_v37 = vld [vmem:[#allocation11 + $0xf8] sm:$0xff] }
 0x181   :  { %2592 = vmatpush.bf16.msrb.mxu3 %v4140_v1 }
 0x182   :  { %2579 = vmatpush.bf16.msrb.mxu2 %v4012_v17  ;;  %2555 = vmatpush.bf16.msrb.mxu0 %v3724_v11  ;;  %v2349_v40 = vpop.f32.mrf.mxu0  ;;  %v2337_v47 = vadd.f32 %v2336_v36, %v2324_v39 }
 0x183   :  { %2568 = vmatpush.bf16.msrb.mxu1 %v3852_v14 }
 0x184   :  { %v2350_v55 = vadd.f32 %v2349_v40, %v2337_v47  ;;  %v4699_v40 = vld [vmem:[#allocation11 + $0xf0] sm:$0xff]  ;;  %v4697_v47 = vld [vmem:[#allocation11 + $0xe0] sm:$0xff] }
 0x185   :  { %2593 = vmatpush.bf16.msrb.mxu3 %v4124_v20  ;;  %2556 = vmatmul.bf16.vlgmr.msrb.gmra.mxu0 %v4995_v6  ;;  %v4673_v6 = vld [vmem:[#allocation11 + $0x20] sm:$0xff]  ;;  %v2362_v41 = vpop.f32.mrf.mxu1 }
 0x186   :  { %2868 = vmatpush.bf16.msra.mxu0 %v4676_v15  ;;  %2580 = vmatpush.bf16.msrb.mxu2 %v3996_v18  ;;  %v2363_v17 = vadd.f32 %v2362_v41, %v2350_v55 }
 0x187   :  { %2881 = vmatpush.bf16.msra.mxu1 %v4684_v19  ;;  %v2325_v48 = vpop.f32.mrf.mxu2  ;;  %v2338_v52 = vpop.f32.mrf.mxu3  ;;  %v4688_v19 = vld [vmem:[#allocation11 + $0x98] sm:$0xff] }
 0x188   :  { %2569 = vmatmul.bf16.vlgmr.msrb.gmra.mxu1 %v4998_v9  ;;  %v4681_v9 = vld [vmem:[#allocation11 + $0x60] sm:$0xff]  ;;  %v4696_v52 = vld [vmem:[#allocation11 + $0xd8] sm:$0xff] }
 0x189   :  { %2594 = vmatpush.bf16.msrb.mxu3 %v4108_v30 }
 0x18a   :  { %2869 = vmatpush.bf16.msra.mxu0 %v4675_v49  ;;  %2581 = vmatpush.bf16.msrb.mxu2 %v3980_v3  ;;  %v2351_v0 = vpop.f32.mrf.mxu0  ;;  %v4685_v49 = vld [vmem:[#allocation11 + $0x80] sm:$0xff] }
 0x18b   :  { %2882 = vmatpush.bf16.msra.mxu1 %v4683_v28  ;;  %v4694_v0 = vld [vmem:[#allocation11 + $0xc8] sm:$0xff] }
 0x18c   :  { %2595 = vmatmul.bf16.vlgmr.msrb.gmra.mxu3 %v5004_v44 }
 0x18d   :  { %2582 = vmatmul.bf16.vlgmr.msrb.gmra.mxu2 %v5002_v50  ;;  %v2259_v50 = vadd.f32 %v5037_v5, %v2246_v53  ;;  %v2364_v58 = vpop.f32.mrf.mxu1  ;;  %v4692_v5 = vld [vmem:[#allocation11 + $0xb8] sm:$0xff]  ;;  %2907 = vmatpush.bf16.msra.mxu3 %v4700_v37 }
 0x18e   :  { %2870 = vmatpush.bf16.msra.mxu0 %v4674_v32  ;;  %2894 = vmatpush.bf16.msra.mxu2 %v4692_v5 }
 0x18f   :  { %2883 = vmatpush.bf16.msra.mxu1 %v4682_v10  ;;  %v2272_v44 = vadd.f32 %v5042_v51, %v2259_v50  ;;  %v2388_v63 = vpop.f32.mrf.mxu3  ;;  %v4677_v51 = vld [vmem:[#allocation11 + $0x40] sm:$0xff] }
 0x190   :  { %v2375_v62 = vpop.f32.mrf.mxu2 }
 0x191   :  { %v2285_v60 = vadd.f32 %v5044_v56, %v2272_v44  ;;  %v2376_v4 = vadd.f32 %v2375_v62, %v2363_v17  ;;  %2908 = vmatpush.bf16.msra.mxu3 %v4699_v40  ;;  %v4695_v44 = vld [vmem:[#allocation11 + $0xd0] sm:$0xff] }
 0x192   :  { %2871 = vmatpush.bf16.msra.mxu0 %v4673_v6  ;;  %2895 = vmatpush.bf16.msra.mxu2 %v4691_v12 }
 0x193   :  { %2884 = vmatpush.bf16.msra.mxu1 %v4681_v9  ;;  %v2600_v1 = vmax.f32 %v2285_v60, 0.0  ;;  %v2389_v7 = vadd.f32 %v2388_v63, %v2376_v4  ;;  %v4693_v60 = vld [vmem:[#allocation11 + $0xc0] sm:$0xff] }
 0x195   :  { %v2604_v8 = vpack.c.bf16 %v2600_v1, %v2600_v1  ;;  %v2601_v11 = vmax.f32 %v2389_v7, 0.0 }
 0x196   :  { %2872 = vmatpush.bf16.msra.mxu0 %v4672_v42  ;;  %2896 = vmatpush.bf16.msra.mxu2 %v4690_v13 }
 0x197   :  { %2885 = vmatpush.bf16.msra.mxu1 %v4680_v46  ;;  %v2605_v56 = vpack.c.bf16 %v2601_v11, %v2601_v11  ;;  %v2390_v15 = vpop.f32.mrf.mxu3  ;;  %v4698_v46 = vld [vmem:[#allocation11 + $0xe8] sm:$0xff] }
 0x198   :  { %v2377_v14 = vpop.f32.mrf.mxu2  ;;  %2909 = vmatpush.bf16.msra.mxu3 %v4698_v46 }
 0x19a   :  { %2873 = vmatpush.bf16.msra.mxu0 %v4671_v57  ;;  %2897 = vmatpush.bf16.msra.mxu2 %v4689_v16 }
 0x19b   :  { %2886 = vmatpush.bf16.msra.mxu1 %v4679_v54 }
 0x19c   :  { %2910 = vmatpush.bf16.msra.mxu3 %v4697_v47 }
 0x19e   :  { %2874 = vmatpush.bf16.msra.mxu0 %v4670_v59  ;;  %2898 = vmatpush.bf16.msra.mxu2 %v4688_v19 }
 0x19f   :  { %2887 = vmatpush.bf16.msra.mxu1 %v4678_v61  ;;  %v899_v61 = vperm.slane %v5040_v45, 3 }
 0x1a0   :  { %2911 = vmatpush.bf16.msra.mxu3 %v4696_v52 }
 0x1a2   :  { %2875 = vmatpush.bf16.msra.mxu0 %v4669_v22  ;;  %v2401_v18 = vpop.f32.mrf.mxu0  ;;  %2899 = vmatpush.bf16.msra.mxu2 %v4687_v43 }
 0x1a3   :  { %2888 = vmatpush.bf16.msra.mxu1 %v4677_v51  ;;  %v2402_v28 = vadd.f32 %v2401_v18, %v898_v26 }
 0x1a4   :  { %2912 = vmatpush.bf16.msra.mxu3 %v4695_v44 }
 0x1a5   :  { %2876 = vmatmul.bf16.vlgmr.msra.gmra.mxu0 %v2604_v8  ;;  %v2414_v20 = vpop.f32.mrf.mxu1 }
 0x1a6   :  { %2889 = vmatmul.bf16.vlgmr.msra.gmra.mxu1 %v2605_v56  ;;  %2900 = vmatpush.bf16.msra.mxu2 %v4686_v2  ;;  %v2415_v29 = vadd.f32 %v2414_v20, %v2402_v28  ;;  %v4714_v20 = vld [vmem:[%s5074_s6] ss:$0 sm:$0xff] }
 0x1a8   :  { %2913 = vmatpush.bf16.msra.mxu3 %v4694_v0 }
 0x1aa   :  { %v2403_v21 = vpop.f32.mrf.mxu0  ;;  %2901 = vmatpush.bf16.msra.mxu2 %v4685_v49 }
 0x1ac   :  { %2914 = vmatpush.bf16.msra.mxu3 %v4693_v60 }
 0x1ad   :  { %v2416_v23 = vpop.f32.mrf.mxu1 }
 0x1af   :  { %v2440_v25 = vpop.f32.mrf.mxu3 }
 0x1b0   :  { %v2427_v24 = vpop.f32.mrf.mxu2 }
 0x1b1   :  { %v2428_v31 = vadd.f32 %v2427_v24, %v2415_v29 }
 0x1b3   :  { %v2441_v33 = vadd.f32 %v2440_v25, %v2428_v31 }
 0x1b7   :  { %v2442_v3 = vpop.f32.mrf.mxu3 }
 0x1b8   :  { %v2429_v27 = vpop.f32.mrf.mxu2 }
 0x1c2   :  { %v2453_v30 = vpop.f32.mrf.mxu0 }
 0x1c3   :  { %v2454_v34 = vadd.f32 %v2453_v30, %v2441_v33 }
 0x1c5   :  { %v2466_v32 = vpop.f32.mrf.mxu1 }
 0x1c6   :  { %v2467_v36 = vadd.f32 %v2466_v32, %v2454_v34 }
 0x1ca   :  { %v2455_v10 = vpop.f32.mrf.mxu0 }
 0x1cd   :  { %v2468_v35 = vpop.f32.mrf.mxu1 }
 0x1cf   :  { %v2492_v9 = vpop.f32.mrf.mxu3 }
 0x1d0   :  { %v2479_v6 = vpop.f32.mrf.mxu2 }
 0x1d1   :  { %v2480_v38 = vadd.f32 %v2479_v6, %v2467_v36 }
 0x1d3   :  { %v2493_v53 = vadd.f32 %v2492_v9, %v2480_v38 }
 0x1d5   :  { %v2602_v39 = vmax.f32 %v2493_v53, 0.0 }
 0x1d7   :  { %v2606_v41 = vpack.c.bf16 %v2602_v39, %v2602_v39  ;;  %v2494_v50 = vpop.f32.mrf.mxu3 }
 0x1d8   :  { %v2481_v42 = vpop.f32.mrf.mxu2 }
 0x1d9   :  { %2902 = vmatmul.bf16.vlgmr.msra.gmra.mxu2 %v2606_v41 }
 0x1e2   :  { %v2505_v48 = vpop.f32.mrf.mxu0 }
 0x1e3   :  { %v2506_v62 = vadd.f32 %v2505_v48, %v899_v61 }
 0x1e5   :  { %v2518_v57 = vpop.f32.mrf.mxu1 }
 0x1e6   :  { %v2519_v63 = vadd.f32 %v2518_v57, %v2506_v62 }
 0x1ea   :  { %v2507_v54 = vpop.f32.mrf.mxu0 }
 0x1ed   :  { %v2520_v55 = vpop.f32.mrf.mxu1 }
 0x1ef   :  { %v2544_v59 = vpop.f32.mrf.mxu3 }
 0x1f0   :  { %v2531_v58 = vpop.f32.mrf.mxu2 }
 0x1f1   :  { %v2532_v1 = vadd.f32 %v2531_v58, %v2519_v63 }
 0x1f3   :  { %v2545_v51 = vadd.f32 %v2544_v59, %v2532_v1 }
 0x1f7   :  { %v2546_v5 = vpop.f32.mrf.mxu3 }
 0x1f8   :  { %v2533_v17 = vpop.f32.mrf.mxu2 }
 0x202   :  { %v2557_v22 = vpop.f32.mrf.mxu0 }
 0x203   :  { %v2558_v7 = vadd.f32 %v2557_v22, %v2545_v51 }
 0x205   :  { %v2570_v4 = vpop.f32.mrf.mxu1 }
 0x206   :  { %v2571_v12 = vadd.f32 %v2570_v4, %v2558_v7 }
 0x20a   :  { %v2559_v8 = vpop.f32.mrf.mxu0 }
 0x20d   :  { %v2572_v11 = vpop.f32.mrf.mxu1 }
 0x20f   :  { %v2596_v14 = vpop.f32.mrf.mxu3 }
 0x210   :  { %v2583_v56 = vpop.f32.mrf.mxu2 }
 0x211   :  { %v2584_v13 = vadd.f32 %v2583_v56, %v2571_v12 }
 0x213   :  { %v2597_v15 = vadd.f32 %v2596_v14, %v2584_v13 }
 0x215   :  { %v2603_v16 = vmax.f32 %v2597_v15, 0.0 }
 0x217   :  { %v2607_v18 = vpack.c.bf16 %v2603_v16, %v2603_v16  ;;  %v2598_v45 = vpop.f32.mrf.mxu3 }
 0x218   :  { %v2585_v19 = vpop.f32.mrf.mxu2 }
 0x219   :  { %2915 = vmatmul.bf16.vlgmr.msra.gmra.mxu3 %v2607_v18 }
 0x222   :  { %v2877_v43 = vpop.f32.mrf.mxu0 }
 0x223   :  { %v2878_v21 = vadd.f32 %v4714_v20, %v2877_v43  ;;  %v2890_v23 = vpop.f32.mrf.mxu1 }
 0x225   :  { %v2891_v2 = vadd.f32 %v2890_v23, %v2878_v21 }
 0x22a   :  { %v2879_v24 = vpop.f32.mrf.mxu0 }
 0x22b   :  { %v2892_v25 = vpop.f32.mrf.mxu1 }
 0x25c   :  { %v2903_v49 = vpop.f32.mrf.mxu2 }
 0x25d   :  { %v2904_v27 = vadd.f32 %v2903_v49, %v2891_v2 }
 0x264   :  { %v2905_v26 = vpop.f32.mrf.mxu2 }
 0x29c   :  { %v2916_v3 = vpop.f32.mrf.mxu3 }
 0x29d   :  { %v2917_v28 = vadd.f32 %v2916_v3, %v2904_v27 }
 0x29f   :  { %2920 = vst [vmem:[#allocation13] sm:$0xff] %v2917_v28 }
 0x2a0   :  { %2931 = dma.vmem_to_hbm [thread:$0]  %s2927_s11, 128, %s2929_s14, [#allocation4]  }
 0x2a4   :  { %v2918_v29 = vpop.f32.mrf.mxu3 }
 0x2a5   :  { %4891 = dma.done.wait [#allocation4], 128  }
 0x2a6   :  { %4892 = vsyncadd [#allocation4], 4294967168 }
 0x2a7   :  { %2936 = vsyncpa [#allocation3], 1 }
 0x2a8   :  { %2937 = vsyncpa [#allocation6], 1 }
 0x2a9   :  { %2938 = vsyncpa [#allocation9], 1 }
 0x2aa   :  { %2939 = vsyncpa [#allocation12], 1 }
 0x2ab   :  { %2940 = vsyncpa [#allocation4], 1 }

</bundles_post_ra>
